<compile_context>
chip_gen: v7x
topology: tpu7x:2x2x1
jax: 0.10.0
libtpu: 0.0.40
codegen_flags: <defaults>
</compile_context>

<pallas_src>
import functools

import jax
import jax.numpy as jnp
from jax.experimental import pallas as pl
from jax.experimental.pallas import tpu as pltpu

BN_EPS = 1e-5
LANES = 128
NEG_BIG = -1e30  # mask value for padded class lanes


def _bn_relu(h, gamma, beta):
    """BatchNorm1d (training mode: batch stats, biased variance) + ReLU.

    Single pass over the batch axis: var = E[h^2] - mean^2.  f32 math.
    """
    inv_n = 1.0 / h.shape[0]
    mean = jnp.sum(h, axis=0, keepdims=True) * inv_n
    ex2 = jnp.sum(h * h, axis=0, keepdims=True) * inv_n
    var = ex2 - mean * mean
    y = (h - mean) * jax.lax.rsqrt(var + BN_EPS) * gamma + beta
    return jnp.maximum(y, 0.0)


def _mm(h, w_ref):
    # bf16 MXU matmul with f32 accumulation (weights already bf16 in VMEM).
    return jnp.dot(h.astype(jnp.bfloat16), w_ref[...],
                   preferred_element_type=jnp.float32)


def top_model_kernel(
    num_classes,                 # static: number of real output lanes
    a_ref, b_ref,                # bottom-model outputs        [B, 128] each
    g0a_ref, b0a_ref,            # bn0top gamma/beta, feats   0..127  [1, 128]
    g0b_ref, b0b_ref,            # bn0top gamma/beta, feats 128..255  [1, 128]
    w1a_ref, w1b_ref, c1_ref,    # fc1top split over K: [128,128]x2 bf16, [1,128]
    g1_ref, b1_ref,              # bn1top                              [1, 128]
    w2_ref, c2_ref,              # fc2top [128,256] bf16, [1,256]
    g2_ref, b2_ref,              # bn2top                              [1, 256]
    w3_ref, c3_ref,              # fc3top [256,512] bf16, [1,512]
    g3_ref, b3_ref,              # bn3top                              [1, 512]
    w4_ref, c4_ref,              # fc4top (class-padded) [512,128] bf16, [1,128]
    o_ref,                       # output [B, 128] (lane-padded classes)
):
    xa = a_ref[...].astype(jnp.float32)
    xb = b_ref[...].astype(jnp.float32)

    # fc1(relu(bn0(cat(a, b)))) with the concat fused away: BN0 stats are
    # per-feature, so the two halves are independent and fc1's reduction
    # splits cleanly into two 128-deep matmuls.
    ha = _bn_relu(xa, g0a_ref[...], b0a_ref[...])
    hb = _bn_relu(xb, g0b_ref[...], b0b_ref[...])
    h = _mm(ha, w1a_ref) + _mm(hb, w1b_ref) + c1_ref[...]

    h = _bn_relu(h, g1_ref[...], b1_ref[...])
    h = _mm(h, w2_ref) + c2_ref[...]

    h = _bn_relu(h, g2_ref[...], b2_ref[...])
    h = _mm(h, w3_ref) + c3_ref[...]

    h = _bn_relu(h, g3_ref[...], b3_ref[...])
    h = _mm(h, w4_ref) + c4_ref[...]

    # Mask padded class lanes before max / logsumexp.
    col = jax.lax.broadcasted_iota(jnp.int32, h.shape, 1)
    h = jnp.where(col < num_classes, h, NEG_BIG)

    # log_softmax over the (lane) class axis.
    m = jnp.max(h, axis=-1, keepdims=True)
    z = h - m
    lse = jnp.log(jnp.sum(jnp.exp(z), axis=-1, keepdims=True))
    o_ref[...] = (z - lse).astype(o_ref.dtype)


def _full_spec(shape):
    # Tiny problem: every operand is a single full-array VMEM block.
    return pl.BlockSpec(shape, lambda i, _n=len(shape): (0,) * _n)


@functools.partial(jax.jit, static_argnames=("output_times",))
def fake_top_model_forward(input_a, input_b, kparams, *, output_times):
    B = input_a.shape[0]
    assert B % 8 == 0, "batch must be a multiple of 8 sublanes for this kernel"
    o_pad = kparams[-2].shape[-1]  # padded class lanes (multiple of 128)

    operands = (input_a, input_b) + tuple(kparams)
    kernel = functools.partial(top_model_kernel, output_times)

    flops = 2 * B * (128 * 128 * 2 + 128 * 256 + 256 * 512 + 512 * o_pad)
    bytes_accessed = int(
        sum(op.size * op.dtype.itemsize for op in operands) + B * o_pad * 4)

    out = pl.pallas_call(
        kernel,
        out_shape=jax.ShapeDtypeStruct((B, o_pad), jnp.float32),
        grid_spec=pltpu.PrefetchScalarGridSpec(
            num_scalar_prefetch=0,
            grid=(1,),
            in_specs=[_full_spec(op.shape) for op in operands],
            out_specs=_full_spec((B, o_pad)),
        ),
        compiler_params=pltpu.CompilerParams(
            dimension_semantics=("arbitrary",)),
        cost_estimate=pl.CostEstimate(
            flops=flops,
            transcendentals=B * (o_pad + 8),
            bytes_accessed=bytes_accessed),
    )(*operands)
    # Slice off the padded class lanes (tiny XLA op).
    return out[:, :output_times]
    # TODO(synk): for realistic batches, tile B on a 'parallel' grid axis with
    # a two-pass BN (stats pass into scratch) instead of one full-array block.


def init_params(key, output_times):
    """Deterministic synthetic parameters (shapes from the module __init__)."""
    ks = jax.random.split(key, 8)

    def linear(k, fan_in, fan_out):
        # weight stored transposed [in, out]; bias as [out].
        w = jax.random.normal(k, (fan_in, fan_out), jnp.float32) * 0.05
        c = jnp.zeros((fan_out,), jnp.float32)
        return w, c

    def bn(k, feats):
        gamma = 1.0 + 0.1 * jax.random.normal(k, (feats,), jnp.float32)
        beta = jnp.zeros((feats,), jnp.float32)
        return gamma, beta

    g0, b0 = bn(ks[0], 256)
    w1, c1 = linear(ks[1], 256, 128)
    g1, b1 = bn(ks[2], 128)
    w2, c2 = linear(ks[3], 128, 256)
    g2, b2 = bn(ks[4], 256)
    w3, c3 = linear(ks[5], 256, 512)
    g3, b3 = bn(ks[6], 512)
    w4, c4 = linear(ks[7], 512, output_times)
    return (g0, b0, w1, c1, g1, b1, w2, c2, g2, b2, w3, c3, g3, b3, w4, c4)


def prepare_params(params, output_times):
    """One-time conversion to kernel-ready operands:
       - bn0 / fc1 split into the a/b halves (fuses the concat away);
       - fc weights cast to bfloat16 (halves weight DMA);
       - fc4 output dim zero-padded to a 128-lane multiple;
       - BN params / biases reshaped to [1, F] float32."""
    (g0, b0, w1, c1, g1, b1, w2, c2, g2, b2, w3, c3, g3, b3, w4, c4) = params

    def row(v):
        return v.reshape(1, -1).astype(jnp.float32)

    def bf(w):
        return w.astype(jnp.bfloat16)

    o_pad = max(LANES, ((output_times + LANES - 1) // LANES) * LANES)
    w4p = jnp.zeros((w4.shape[0], o_pad), jnp.float32).at[:, :output_times].set(w4)
    c4p = jnp.zeros((o_pad,), jnp.float32).at[:output_times].set(c4)

    return (
        row(g0[:128]), row(b0[:128]),
        row(g0[128:]), row(b0[128:]),
        bf(w1[:128]), bf(w1[128:]), row(c1),
        row(g1), row(b1),
        bf(w2), row(c2),
        row(g2), row(b2),
        bf(w3), row(c3),
        row(g3), row(b3),
        bf(w4p), row(c4p),
    )


def reference_forward(input_a, input_b, params):
    """Pure-JAX reference mirroring the PyTorch forward (training-mode BN),
    with the same intentional bf16-matmul / f32-accumulation precision."""
    (g0, b0, w1, c1, g1, b1, w2, c2, g2, b2, w3, c3, g3, b3, w4, c4) = params
    x = jnp.concatenate([input_a, input_b], axis=1)

    def bn_relu(h, g, b):
        mean = jnp.mean(h, axis=0, keepdims=True)
        var = jnp.mean((h - mean) ** 2, axis=0, keepdims=True)
        return jnp.maximum((h - mean) / jnp.sqrt(var + BN_EPS) * g + b, 0.0)

    def mm(h, w):
        return jnp.dot(h.astype(jnp.bfloat16), w.astype(jnp.bfloat16),
                       preferred_element_type=jnp.float32)

    h = mm(bn_relu(x, g0, b0), w1) + c1
    h = mm(bn_relu(h, g1, b1), w2) + c2
    h = mm(bn_relu(h, g2, b2), w3) + c3
    h = mm(bn_relu(h, g3, b3), w4) + c4
    return jax.nn.log_softmax(h, axis=1)


if __name__ == "__main__":
    OUTPUT_TIMES = 10   # number of classes ("output_times" in the module)
    BATCH = 8           # BatchNorm training mode needs batch > 1

    key = jax.random.PRNGKey(0)
    k_a, k_b, k_p = jax.random.split(key, 3)

    # Each bottom model contributes 128 features; concat gives 256.
    input_a = jax.random.normal(k_a, (BATCH, 128), jnp.float32)
    input_b = jax.random.normal(k_b, (BATCH, 128), jnp.float32)

    params = init_params(k_p, OUTPUT_TIMES)
    kparams = prepare_params(params, OUTPUT_TIMES)

    out = fake_top_model_forward(input_a, input_b, kparams,
                                 output_times=OUTPUT_TIMES)
    out = jax.block_until_ready(out)

    ref = reference_forward(input_a, input_b, params)
    assert out.shape == (BATCH, OUTPUT_TIMES)
    assert jnp.allclose(out, ref, atol=5e-3, rtol=5e-3), "mismatch vs reference"

    print("KERNEL_OK")
</pallas_src>

<mosaic_0001>
module attributes {stable_mosaic.version = 11 : i64} {
  func.func @top_model_kernel(%arg0: i32, %arg1: memref<8x128xf32, #tpu.memory_space<vmem>>, %arg2: memref<8x128xf32, #tpu.memory_space<vmem>>, %arg3: memref<1x128xf32, #tpu.memory_space<vmem>>, %arg4: memref<1x128xf32, #tpu.memory_space<vmem>>, %arg5: memref<1x128xf32, #tpu.memory_space<vmem>>, %arg6: memref<1x128xf32, #tpu.memory_space<vmem>>, %arg7: memref<128x128xbf16, #tpu.memory_space<vmem>>, %arg8: memref<128x128xbf16, #tpu.memory_space<vmem>>, %arg9: memref<1x128xf32, #tpu.memory_space<vmem>>, %arg10: memref<1x128xf32, #tpu.memory_space<vmem>>, %arg11: memref<1x128xf32, #tpu.memory_space<vmem>>, %arg12: memref<128x256xbf16, #tpu.memory_space<vmem>>, %arg13: memref<1x256xf32, #tpu.memory_space<vmem>>, %arg14: memref<1x256xf32, #tpu.memory_space<vmem>>, %arg15: memref<1x256xf32, #tpu.memory_space<vmem>>, %arg16: memref<256x512xbf16, #tpu.memory_space<vmem>>, %arg17: memref<1x512xf32, #tpu.memory_space<vmem>>, %arg18: memref<1x512xf32, #tpu.memory_space<vmem>>, %arg19: memref<1x512xf32, #tpu.memory_space<vmem>>, %arg20: memref<512x128xbf16, #tpu.memory_space<vmem>>, %arg21: memref<1x128xf32, #tpu.memory_space<vmem>>, %arg22: memref<8x128xf32, #tpu.memory_space<vmem>>) attributes {dimension_semantics = [#tpu.dimension_semantics<arbitrary>], iteration_bounds = array<i64: 1>, scalar_prefetch = 0 : i64, scratch_operands = 0 : i64, tpu.core_type = #tpu.core_type<tc>, window_params = [{pipeline_mode = #tpu.pipeline_mode<synchronous>, transform_indices = @transform_0, window_bounds = array<i64: 8, 128>}, {pipeline_mode = #tpu.pipeline_mode<synchronous>, transform_indices = @transform_1, window_bounds = array<i64: 8, 128>}, {pipeline_mode = #tpu.pipeline_mode<synchronous>, transform_indices = @transform_2, window_bounds = array<i64: 1, 128>}, {pipeline_mode = #tpu.pipeline_mode<synchronous>, transform_indices = @transform_3, window_bounds = array<i64: 1, 128>}, {pipeline_mode = #tpu.pipeline_mode<synchronous>, transform_indices = @transform_4, window_bounds = array<i64: 1, 128>}, {pipeline_mode = #tpu.pipeline_mode<synchronous>, transform_indices = @transform_5, window_bounds = array<i64: 1, 128>}, {pipeline_mode = #tpu.pipeline_mode<synchronous>, transform_indices = @transform_6, window_bounds = array<i64: 128, 128>}, {pipeline_mode = #tpu.pipeline_mode<synchronous>, transform_indices = @transform_7, window_bounds = array<i64: 128, 128>}, {pipeline_mode = #tpu.pipeline_mode<synchronous>, transform_indices = @transform_8, window_bounds = array<i64: 1, 128>}, {pipeline_mode = #tpu.pipeline_mode<synchronous>, transform_indices = @transform_9, window_bounds = array<i64: 1, 128>}, {pipeline_mode = #tpu.pipeline_mode<synchronous>, transform_indices = @transform_10, window_bounds = array<i64: 1, 128>}, {pipeline_mode = #tpu.pipeline_mode<synchronous>, transform_indices = @transform_11, window_bounds = array<i64: 128, 256>}, {pipeline_mode = #tpu.pipeline_mode<synchronous>, transform_indices = @transform_12, window_bounds = array<i64: 1, 256>}, {pipeline_mode = #tpu.pipeline_mode<synchronous>, transform_indices = @transform_13, window_bounds = array<i64: 1, 256>}, {pipeline_mode = #tpu.pipeline_mode<synchronous>, transform_indices = @transform_14, window_bounds = array<i64: 1, 256>}, {pipeline_mode = #tpu.pipeline_mode<synchronous>, transform_indices = @transform_15, window_bounds = array<i64: 256, 512>}, {pipeline_mode = #tpu.pipeline_mode<synchronous>, transform_indices = @transform_16, window_bounds = array<i64: 1, 512>}, {pipeline_mode = #tpu.pipeline_mode<synchronous>, transform_indices = @transform_17, window_bounds = array<i64: 1, 512>}, {pipeline_mode = #tpu.pipeline_mode<synchronous>, transform_indices = @transform_18, window_bounds = array<i64: 1, 512>}, {pipeline_mode = #tpu.pipeline_mode<synchronous>, transform_indices = @transform_19, window_bounds = array<i64: 512, 128>}, {pipeline_mode = #tpu.pipeline_mode<synchronous>, transform_indices = @transform_20, window_bounds = array<i64: 1, 128>}, {pipeline_mode = #tpu.pipeline_mode<synchronous>, transform_indices = @transform_21, window_bounds = array<i64: 8, 128>}]} {
    %c0 = arith.constant 0 : index
    %c0_0 = arith.constant 0 : index
    %0 = vector.load %arg1[%c0, %c0_0] : memref<8x128xf32, #tpu.memory_space<vmem>>, vector<8x128xf32>
    %c0_1 = arith.constant 0 : index
    %c0_2 = arith.constant 0 : index
    %1 = vector.load %arg2[%c0_1, %c0_2] : memref<8x128xf32, #tpu.memory_space<vmem>>, vector<8x128xf32>
    %c0_3 = arith.constant 0 : index
    %c0_4 = arith.constant 0 : index
    %2 = vector.load %arg3[%c0_3, %c0_4] : memref<1x128xf32, #tpu.memory_space<vmem>>, vector<1x128xf32>
    %c0_5 = arith.constant 0 : index
    %c0_6 = arith.constant 0 : index
    %3 = vector.load %arg4[%c0_5, %c0_6] : memref<1x128xf32, #tpu.memory_space<vmem>>, vector<1x128xf32>
    %cst = arith.constant dense<0.000000e+00> : vector<128xf32>
    %4 = vector.multi_reduction <add>, %0, %cst [0] : vector<8x128xf32> to vector<128xf32>
    %5 = vector.shape_cast %4 : vector<128xf32> to vector<1x128xf32>
    %cst_7 = arith.constant 1.250000e-01 : f32
    %6 = vector.broadcast %cst_7 : f32 to vector<1x128xf32>
    %7 = arith.mulf %5, %6 : vector<1x128xf32>
    %8 = arith.mulf %0, %0 : vector<8x128xf32>
    %cst_8 = arith.constant dense<0.000000e+00> : vector<128xf32>
    %9 = vector.multi_reduction <add>, %8, %cst_8 [0] : vector<8x128xf32> to vector<128xf32>
    %10 = vector.shape_cast %9 : vector<128xf32> to vector<1x128xf32>
    %cst_9 = arith.constant 1.250000e-01 : f32
    %11 = vector.broadcast %cst_9 : f32 to vector<1x128xf32>
    %12 = arith.mulf %10, %11 : vector<1x128xf32>
    %13 = arith.mulf %7, %7 : vector<1x128xf32>
    %14 = arith.subf %12, %13 : vector<1x128xf32>
    %15 = vector.broadcast %7 : vector<1x128xf32> to vector<8x128xf32>
    %16 = arith.subf %0, %15 : vector<8x128xf32>
    %cst_10 = arith.constant 9.99999974E-6 : f32
    %17 = vector.broadcast %cst_10 : f32 to vector<1x128xf32>
    %18 = arith.addf %14, %17 : vector<1x128xf32>
    %19 = math.rsqrt %18 : vector<1x128xf32>
    %20 = vector.broadcast %19 : vector<1x128xf32> to vector<8x128xf32>
    %21 = arith.mulf %16, %20 : vector<8x128xf32>
    %22 = vector.broadcast %2 : vector<1x128xf32> to vector<8x128xf32>
    %23 = arith.mulf %21, %22 : vector<8x128xf32>
    %24 = vector.broadcast %3 : vector<1x128xf32> to vector<8x128xf32>
    %25 = arith.addf %23, %24 : vector<8x128xf32>
    %cst_11 = arith.constant 0.000000e+00 : f32
    %26 = vector.broadcast %cst_11 : f32 to vector<8x128xf32>
    %27 = arith.maximumf %25, %26 : vector<8x128xf32>
    %c0_12 = arith.constant 0 : index
    %c0_13 = arith.constant 0 : index
    %28 = vector.load %arg5[%c0_12, %c0_13] : memref<1x128xf32, #tpu.memory_space<vmem>>, vector<1x128xf32>
    %c0_14 = arith.constant 0 : index
    %c0_15 = arith.constant 0 : index
    %29 = vector.load %arg6[%c0_14, %c0_15] : memref<1x128xf32, #tpu.memory_space<vmem>>, vector<1x128xf32>
    %cst_16 = arith.constant dense<0.000000e+00> : vector<128xf32>
    %30 = vector.multi_reduction <add>, %1, %cst_16 [0] : vector<8x128xf32> to vector<128xf32>
    %31 = vector.shape_cast %30 : vector<128xf32> to vector<1x128xf32>
    %cst_17 = arith.constant 1.250000e-01 : f32
    %32 = vector.broadcast %cst_17 : f32 to vector<1x128xf32>
    %33 = arith.mulf %31, %32 : vector<1x128xf32>
    %34 = arith.mulf %1, %1 : vector<8x128xf32>
    %cst_18 = arith.constant dense<0.000000e+00> : vector<128xf32>
    %35 = vector.multi_reduction <add>, %34, %cst_18 [0] : vector<8x128xf32> to vector<128xf32>
    %36 = vector.shape_cast %35 : vector<128xf32> to vector<1x128xf32>
    %cst_19 = arith.constant 1.250000e-01 : f32
    %37 = vector.broadcast %cst_19 : f32 to vector<1x128xf32>
    %38 = arith.mulf %36, %37 : vector<1x128xf32>
    %39 = arith.mulf %33, %33 : vector<1x128xf32>
    %40 = arith.subf %38, %39 : vector<1x128xf32>
    %41 = vector.broadcast %33 : vector<1x128xf32> to vector<8x128xf32>
    %42 = arith.subf %1, %41 : vector<8x128xf32>
    %cst_20 = arith.constant 9.99999974E-6 : f32
    %43 = vector.broadcast %cst_20 : f32 to vector<1x128xf32>
    %44 = arith.addf %40, %43 : vector<1x128xf32>
    %45 = math.rsqrt %44 : vector<1x128xf32>
    %46 = vector.broadcast %45 : vector<1x128xf32> to vector<8x128xf32>
    %47 = arith.mulf %42, %46 : vector<8x128xf32>
    %48 = vector.broadcast %28 : vector<1x128xf32> to vector<8x128xf32>
    %49 = arith.mulf %47, %48 : vector<8x128xf32>
    %50 = vector.broadcast %29 : vector<1x128xf32> to vector<8x128xf32>
    %51 = arith.addf %49, %50 : vector<8x128xf32>
    %cst_21 = arith.constant 0.000000e+00 : f32
    %52 = vector.broadcast %cst_21 : f32 to vector<8x128xf32>
    %53 = arith.maximumf %51, %52 : vector<8x128xf32>
    %54 = arith.truncf %27 : vector<8x128xf32> to vector<8x128xbf16>
    %c0_22 = arith.constant 0 : index
    %c0_23 = arith.constant 0 : index
    %55 = vector.load %arg7[%c0_22, %c0_23] : memref<128x128xbf16, #tpu.memory_space<vmem>>, vector<128x128xbf16>
    %cst_24 = arith.constant dense<0.000000e+00> : vector<8x128xf32>
    %56 = tpu.matmul %54, %55, %cst_24 {dimension_numbers = #tpu.dot_dimension_numbers<[1], [0], [0], [1], [0, 0, 1, 1], [], []>} : vector<8x128xbf16>, vector<128x128xbf16>, vector<8x128xf32> -> vector<8x128xf32>
    %57 = arith.truncf %53 : vector<8x128xf32> to vector<8x128xbf16>
    %c0_25 = arith.constant 0 : index
    %c0_26 = arith.constant 0 : index
    %58 = vector.load %arg8[%c0_25, %c0_26] : memref<128x128xbf16, #tpu.memory_space<vmem>>, vector<128x128xbf16>
    %cst_27 = arith.constant dense<0.000000e+00> : vector<8x128xf32>
    %59 = tpu.matmul %57, %58, %cst_27 {dimension_numbers = #tpu.dot_dimension_numbers<[1], [0], [0], [1], [0, 0, 1, 1], [], []>} : vector<8x128xbf16>, vector<128x128xbf16>, vector<8x128xf32> -> vector<8x128xf32>
    %60 = arith.addf %56, %59 : vector<8x128xf32>
    %c0_28 = arith.constant 0 : index
    %c0_29 = arith.constant 0 : index
    %61 = vector.load %arg9[%c0_28, %c0_29] : memref<1x128xf32, #tpu.memory_space<vmem>>, vector<1x128xf32>
    %62 = vector.broadcast %61 : vector<1x128xf32> to vector<8x128xf32>
    %63 = arith.addf %60, %62 : vector<8x128xf32>
    %c0_30 = arith.constant 0 : index
    %c0_31 = arith.constant 0 : index
    %64 = vector.load %arg10[%c0_30, %c0_31] : memref<1x128xf32, #tpu.memory_space<vmem>>, vector<1x128xf32>
    %c0_32 = arith.constant 0 : index
    %c0_33 = arith.constant 0 : index
    %65 = vector.load %arg11[%c0_32, %c0_33] : memref<1x128xf32, #tpu.memory_space<vmem>>, vector<1x128xf32>
    %cst_34 = arith.constant dense<0.000000e+00> : vector<128xf32>
    %66 = vector.multi_reduction <add>, %63, %cst_34 [0] : vector<8x128xf32> to vector<128xf32>
    %67 = vector.shape_cast %66 : vector<128xf32> to vector<1x128xf32>
    %cst_35 = arith.constant 1.250000e-01 : f32
    %68 = vector.broadcast %cst_35 : f32 to vector<1x128xf32>
    %69 = arith.mulf %67, %68 : vector<1x128xf32>
    %70 = arith.mulf %63, %63 : vector<8x128xf32>
    %cst_36 = arith.constant dense<0.000000e+00> : vector<128xf32>
    %71 = vector.multi_reduction <add>, %70, %cst_36 [0] : vector<8x128xf32> to vector<128xf32>
    %72 = vector.shape_cast %71 : vector<128xf32> to vector<1x128xf32>
    %cst_37 = arith.constant 1.250000e-01 : f32
    %73 = vector.broadcast %cst_37 : f32 to vector<1x128xf32>
    %74 = arith.mulf %72, %73 : vector<1x128xf32>
    %75 = arith.mulf %69, %69 : vector<1x128xf32>
    %76 = arith.subf %74, %75 : vector<1x128xf32>
    %77 = vector.broadcast %69 : vector<1x128xf32> to vector<8x128xf32>
    %78 = arith.subf %63, %77 : vector<8x128xf32>
    %cst_38 = arith.constant 9.99999974E-6 : f32
    %79 = vector.broadcast %cst_38 : f32 to vector<1x128xf32>
    %80 = arith.addf %76, %79 : vector<1x128xf32>
    %81 = math.rsqrt %80 : vector<1x128xf32>
    %82 = vector.broadcast %81 : vector<1x128xf32> to vector<8x128xf32>
    %83 = arith.mulf %78, %82 : vector<8x128xf32>
    %84 = vector.broadcast %64 : vector<1x128xf32> to vector<8x128xf32>
    %85 = arith.mulf %83, %84 : vector<8x128xf32>
    %86 = vector.broadcast %65 : vector<1x128xf32> to vector<8x128xf32>
    %87 = arith.addf %85, %86 : vector<8x128xf32>
    %cst_39 = arith.constant 0.000000e+00 : f32
    %88 = vector.broadcast %cst_39 : f32 to vector<8x128xf32>
    %89 = arith.maximumf %87, %88 : vector<8x128xf32>
    %90 = arith.truncf %89 : vector<8x128xf32> to vector<8x128xbf16>
    %c0_40 = arith.constant 0 : index
    %c0_41 = arith.constant 0 : index
    %91 = vector.load %arg12[%c0_40, %c0_41] : memref<128x256xbf16, #tpu.memory_space<vmem>>, vector<128x256xbf16>
    %cst_42 = arith.constant dense<0.000000e+00> : vector<8x256xf32>
    %92 = tpu.matmul %90, %91, %cst_42 {dimension_numbers = #tpu.dot_dimension_numbers<[1], [0], [0], [1], [0, 0, 1, 1], [], []>} : vector<8x128xbf16>, vector<128x256xbf16>, vector<8x256xf32> -> vector<8x256xf32>
    %c0_43 = arith.constant 0 : index
    %c0_44 = arith.constant 0 : index
    %93 = vector.load %arg13[%c0_43, %c0_44] : memref<1x256xf32, #tpu.memory_space<vmem>>, vector<1x256xf32>
    %94 = vector.broadcast %93 : vector<1x256xf32> to vector<8x256xf32>
    %95 = arith.addf %92, %94 : vector<8x256xf32>
    %c0_45 = arith.constant 0 : index
    %c0_46 = arith.constant 0 : index
    %96 = vector.load %arg14[%c0_45, %c0_46] : memref<1x256xf32, #tpu.memory_space<vmem>>, vector<1x256xf32>
    %c0_47 = arith.constant 0 : index
    %c0_48 = arith.constant 0 : index
    %97 = vector.load %arg15[%c0_47, %c0_48] : memref<1x256xf32, #tpu.memory_space<vmem>>, vector<1x256xf32>
    %cst_49 = arith.constant dense<0.000000e+00> : vector<256xf32>
    %98 = vector.multi_reduction <add>, %95, %cst_49 [0] : vector<8x256xf32> to vector<256xf32>
    %99 = vector.shape_cast %98 : vector<256xf32> to vector<1x256xf32>
    %cst_50 = arith.constant 1.250000e-01 : f32
    %100 = vector.broadcast %cst_50 : f32 to vector<1x256xf32>
    %101 = arith.mulf %99, %100 : vector<1x256xf32>
    %102 = arith.mulf %95, %95 : vector<8x256xf32>
    %cst_51 = arith.constant dense<0.000000e+00> : vector<256xf32>
    %103 = vector.multi_reduction <add>, %102, %cst_51 [0] : vector<8x256xf32> to vector<256xf32>
    %104 = vector.shape_cast %103 : vector<256xf32> to vector<1x256xf32>
    %cst_52 = arith.constant 1.250000e-01 : f32
    %105 = vector.broadcast %cst_52 : f32 to vector<1x256xf32>
    %106 = arith.mulf %104, %105 : vector<1x256xf32>
    %107 = arith.mulf %101, %101 : vector<1x256xf32>
    %108 = arith.subf %106, %107 : vector<1x256xf32>
    %109 = vector.broadcast %101 : vector<1x256xf32> to vector<8x256xf32>
    %110 = arith.subf %95, %109 : vector<8x256xf32>
    %cst_53 = arith.constant 9.99999974E-6 : f32
    %111 = vector.broadcast %cst_53 : f32 to vector<1x256xf32>
    %112 = arith.addf %108, %111 : vector<1x256xf32>
    %113 = math.rsqrt %112 : vector<1x256xf32>
    %114 = vector.broadcast %113 : vector<1x256xf32> to vector<8x256xf32>
    %115 = arith.mulf %110, %114 : vector<8x256xf32>
    %116 = vector.broadcast %96 : vector<1x256xf32> to vector<8x256xf32>
    %117 = arith.mulf %115, %116 : vector<8x256xf32>
    %118 = vector.broadcast %97 : vector<1x256xf32> to vector<8x256xf32>
    %119 = arith.addf %117, %118 : vector<8x256xf32>
    %cst_54 = arith.constant 0.000000e+00 : f32
    %120 = vector.broadcast %cst_54 : f32 to vector<8x256xf32>
    %121 = arith.maximumf %119, %120 : vector<8x256xf32>
    %122 = arith.truncf %121 : vector<8x256xf32> to vector<8x256xbf16>
    %c0_55 = arith.constant 0 : index
    %c0_56 = arith.constant 0 : index
    %123 = vector.load %arg16[%c0_55, %c0_56] : memref<256x512xbf16, #tpu.memory_space<vmem>>, vector<256x512xbf16>
    %cst_57 = arith.constant dense<0.000000e+00> : vector<8x512xf32>
    %124 = tpu.matmul %122, %123, %cst_57 {dimension_numbers = #tpu.dot_dimension_numbers<[1], [0], [0], [1], [0, 0, 1, 1], [], []>} : vector<8x256xbf16>, vector<256x512xbf16>, vector<8x512xf32> -> vector<8x512xf32>
    %c0_58 = arith.constant 0 : index
    %c0_59 = arith.constant 0 : index
    %125 = vector.load %arg17[%c0_58, %c0_59] : memref<1x512xf32, #tpu.memory_space<vmem>>, vector<1x512xf32>
    %126 = vector.broadcast %125 : vector<1x512xf32> to vector<8x512xf32>
    %127 = arith.addf %124, %126 : vector<8x512xf32>
    %c0_60 = arith.constant 0 : index
    %c0_61 = arith.constant 0 : index
    %128 = vector.load %arg18[%c0_60, %c0_61] : memref<1x512xf32, #tpu.memory_space<vmem>>, vector<1x512xf32>
    %c0_62 = arith.constant 0 : index
    %c0_63 = arith.constant 0 : index
    %129 = vector.load %arg19[%c0_62, %c0_63] : memref<1x512xf32, #tpu.memory_space<vmem>>, vector<1x512xf32>
    %cst_64 = arith.constant dense<0.000000e+00> : vector<512xf32>
    %130 = vector.multi_reduction <add>, %127, %cst_64 [0] : vector<8x512xf32> to vector<512xf32>
    %131 = vector.shape_cast %130 : vector<512xf32> to vector<1x512xf32>
    %cst_65 = arith.constant 1.250000e-01 : f32
    %132 = vector.broadcast %cst_65 : f32 to vector<1x512xf32>
    %133 = arith.mulf %131, %132 : vector<1x512xf32>
    %134 = arith.mulf %127, %127 : vector<8x512xf32>
    %cst_66 = arith.constant dense<0.000000e+00> : vector<512xf32>
    %135 = vector.multi_reduction <add>, %134, %cst_66 [0] : vector<8x512xf32> to vector<512xf32>
    %136 = vector.shape_cast %135 : vector<512xf32> to vector<1x512xf32>
    %cst_67 = arith.constant 1.250000e-01 : f32
    %137 = vector.broadcast %cst_67 : f32 to vector<1x512xf32>
    %138 = arith.mulf %136, %137 : vector<1x512xf32>
    %139 = arith.mulf %133, %133 : vector<1x512xf32>
    %140 = arith.subf %138, %139 : vector<1x512xf32>
    %141 = vector.broadcast %133 : vector<1x512xf32> to vector<8x512xf32>
    %142 = arith.subf %127, %141 : vector<8x512xf32>
    %cst_68 = arith.constant 9.99999974E-6 : f32
    %143 = vector.broadcast %cst_68 : f32 to vector<1x512xf32>
    %144 = arith.addf %140, %143 : vector<1x512xf32>
    %145 = math.rsqrt %144 : vector<1x512xf32>
    %146 = vector.broadcast %145 : vector<1x512xf32> to vector<8x512xf32>
    %147 = arith.mulf %142, %146 : vector<8x512xf32>
    %148 = vector.broadcast %128 : vector<1x512xf32> to vector<8x512xf32>
    %149 = arith.mulf %147, %148 : vector<8x512xf32>
    %150 = vector.broadcast %129 : vector<1x512xf32> to vector<8x512xf32>
    %151 = arith.addf %149, %150 : vector<8x512xf32>
    %cst_69 = arith.constant 0.000000e+00 : f32
    %152 = vector.broadcast %cst_69 : f32 to vector<8x512xf32>
    %153 = arith.maximumf %151, %152 : vector<8x512xf32>
    %154 = arith.truncf %153 : vector<8x512xf32> to vector<8x512xbf16>
    %c0_70 = arith.constant 0 : index
    %c0_71 = arith.constant 0 : index
    %155 = vector.load %arg20[%c0_70, %c0_71] : memref<512x128xbf16, #tpu.memory_space<vmem>>, vector<512x128xbf16>
    %cst_72 = arith.constant dense<0.000000e+00> : vector<8x128xf32>
    %156 = tpu.matmul %154, %155, %cst_72 {dimension_numbers = #tpu.dot_dimension_numbers<[1], [0], [0], [1], [0, 0, 1, 1], [], []>} : vector<8x512xbf16>, vector<512x128xbf16>, vector<8x128xf32> -> vector<8x128xf32>
    %c0_73 = arith.constant 0 : index
    %c0_74 = arith.constant 0 : index
    %157 = vector.load %arg21[%c0_73, %c0_74] : memref<1x128xf32, #tpu.memory_space<vmem>>, vector<1x128xf32>
    %158 = vector.broadcast %157 : vector<1x128xf32> to vector<8x128xf32>
    %159 = arith.addf %156, %158 : vector<8x128xf32>
    %160 = tpu.iota {dimensions = array<i32: 1>} : vector<8x128xi32>
    %c10_i32 = arith.constant 10 : i32
    %161 = vector.broadcast %c10_i32 : i32 to vector<8x128xi32>
    %162 = arith.cmpi slt, %160, %161 : vector<8x128xi32>
    %cst_75 = arith.constant -1.000000e+30 : f32
    %163 = vector.broadcast %cst_75 : f32 to vector<8x128xf32>
    %164 = arith.select %162, %159, %163 : vector<8x128xi1>, vector<8x128xf32>
    %cst_76 = arith.constant dense<0xFF800000> : vector<8xf32>
    %165 = vector.multi_reduction <maximumf>, %164, %cst_76 [1] : vector<8x128xf32> to vector<8xf32>
    %166 = vector.shape_cast %165 : vector<8xf32> to vector<8x1xf32>
    %167 = vector.broadcast %166 : vector<8x1xf32> to vector<8x128xf32>
    %168 = arith.subf %164, %167 : vector<8x128xf32>
    %169 = math.exp %168 : vector<8x128xf32>
    %cst_77 = arith.constant dense<0.000000e+00> : vector<8xf32>
    %170 = vector.multi_reduction <add>, %169, %cst_77 [1] : vector<8x128xf32> to vector<8xf32>
    %171 = vector.shape_cast %170 : vector<8xf32> to vector<8x1xf32>
    %172 = math.log %171 : vector<8x1xf32>
    %173 = vector.broadcast %172 : vector<8x1xf32> to vector<8x128xf32>
    %174 = arith.subf %168, %173 : vector<8x128xf32>
    %c0_78 = arith.constant 0 : index
    %c0_79 = arith.constant 0 : index
    %175 = vector.load %arg22[%c0_78, %c0_79] : memref<8x128xf32, #tpu.memory_space<vmem>>, vector<8x128xf32>
    tpu.vector_store %arg22[%c0_78, %c0_79], %174 {strides = array<i32>} : memref<8x128xf32, #tpu.memory_space<vmem>>, vector<8x128xf32>,
    return
  }
  func.func @transform_0(%arg0: i32) -> (i32, i32) {
    %c0_i32 = arith.constant 0 : i32
    %c0_i32_0 = arith.constant 0 : i32
    %c0_i32_1 = arith.constant 0 : i32
    return %c0_i32, %c0_i32_0 : i32, i32
  }
  func.func @transform_1(%arg0: i32) -> (i32, i32) {
    %c0_i32 = arith.constant 0 : i32
    %c0_i32_0 = arith.constant 0 : i32
    %c0_i32_1 = arith.constant 0 : i32
    return %c0_i32, %c0_i32_0 : i32, i32
  }
  func.func @transform_2(%arg0: i32) -> (i32, i32) {
    %c0_i32 = arith.constant 0 : i32
    %c0_i32_0 = arith.constant 0 : i32
    %c0_i32_1 = arith.constant 0 : i32
    return %c0_i32, %c0_i32_0 : i32, i32
  }
  func.func @transform_3(%arg0: i32) -> (i32, i32) {
    %c0_i32 = arith.constant 0 : i32
    %c0_i32_0 = arith.constant 0 : i32
    %c0_i32_1 = arith.constant 0 : i32
    return %c0_i32, %c0_i32_0 : i32, i32
  }
  func.func @transform_4(%arg0: i32) -> (i32, i32) {
    %c0_i32 = arith.constant 0 : i32
    %c0_i32_0 = arith.constant 0 : i32
    %c0_i32_1 = arith.constant 0 : i32
    return %c0_i32, %c0_i32_0 : i32, i32
  }
  func.func @transform_5(%arg0: i32) -> (i32, i32) {
    %c0_i32 = arith.constant 0 : i32
    %c0_i32_0 = arith.constant 0 : i32
    %c0_i32_1 = arith.constant 0 : i32
    return %c0_i32, %c0_i32_0 : i32, i32
  }
  func.func @transform_6(%arg0: i32) -> (i32, i32) {
    %c0_i32 = arith.constant 0 : i32
    %c0_i32_0 = arith.constant 0 : i32
    %c0_i32_1 = arith.constant 0 : i32
    return %c0_i32, %c0_i32_0 : i32, i32
  }
  func.func @transform_7(%arg0: i32) -> (i32, i32) {
    %c0_i32 = arith.constant 0 : i32
    %c0_i32_0 = arith.constant 0 : i32
    %c0_i32_1 = arith.constant 0 : i32
    return %c0_i32, %c0_i32_0 : i32, i32
  }
  func.func @transform_8(%arg0: i32) -> (i32, i32) {
    %c0_i32 = arith.constant 0 : i32
    %c0_i32_0 = arith.constant 0 : i32
    %c0_i32_1 = arith.constant 0 : i32
    return %c0_i32, %c0_i32_0 : i32, i32
  }
  func.func @transform_9(%arg0: i32) -> (i32, i32) {
    %c0_i32 = arith.constant 0 : i32
    %c0_i32_0 = arith.constant 0 : i32
    %c0_i32_1 = arith.constant 0 : i32
    return %c0_i32, %c0_i32_0 : i32, i32
  }
  func.func @transform_10(%arg0: i32) -> (i32, i32) {
    %c0_i32 = arith.constant 0 : i32
    %c0_i32_0 = arith.constant 0 : i32
    %c0_i32_1 = arith.constant 0 : i32
    return %c0_i32, %c0_i32_0 : i32, i32
  }
  func.func @transform_11(%arg0: i32) -> (i32, i32) {
    %c0_i32 = arith.constant 0 : i32
    %c0_i32_0 = arith.constant 0 : i32
    %c0_i32_1 = arith.constant 0 : i32
    return %c0_i32, %c0_i32_0 : i32, i32
  }
  func.func @transform_12(%arg0: i32) -> (i32, i32) {
    %c0_i32 = arith.constant 0 : i32
    %c0_i32_0 = arith.constant 0 : i32
    %c0_i32_1 = arith.constant 0 : i32
    return %c0_i32, %c0_i32_0 : i32, i32
  }
  func.func @transform_13(%arg0: i32) -> (i32, i32) {
    %c0_i32 = arith.constant 0 : i32
    %c0_i32_0 = arith.constant 0 : i32
    %c0_i32_1 = arith.constant 0 : i32
    return %c0_i32, %c0_i32_0 : i32, i32
  }
  func.func @transform_14(%arg0: i32) -> (i32, i32) {
    %c0_i32 = arith.constant 0 : i32
    %c0_i32_0 = arith.constant 0 : i32
    %c0_i32_1 = arith.constant 0 : i32
    return %c0_i32, %c0_i32_0 : i32, i32
  }
  func.func @transform_15(%arg0: i32) -> (i32, i32) {
    %c0_i32 = arith.constant 0 : i32
    %c0_i32_0 = arith.constant 0 : i32
    %c0_i32_1 = arith.constant 0 : i32
    return %c0_i32, %c0_i32_0 : i32, i32
  }
  func.func @transform_16(%arg0: i32) -> (i32, i32) {
    %c0_i32 = arith.constant 0 : i32
    %c0_i32_0 = arith.constant 0 : i32
    %c0_i32_1 = arith.constant 0 : i32
    return %c0_i32, %c0_i32_0 : i32, i32
  }
  func.func @transform_17(%arg0: i32) -> (i32, i32) {
    %c0_i32 = arith.constant 0 : i32
    %c0_i32_0 = arith.constant 0 : i32
    %c0_i32_1 = arith.constant 0 : i32
    return %c0_i32, %c0_i32_0 : i32, i32
  }
  func.func @transform_18(%arg0: i32) -> (i32, i32) {
    %c0_i32 = arith.constant 0 : i32
    %c0_i32_0 = arith.constant 0 : i32
    %c0_i32_1 = arith.constant 0 : i32
    return %c0_i32, %c0_i32_0 : i32, i32
  }
  func.func @transform_19(%arg0: i32) -> (i32, i32) {
    %c0_i32 = arith.constant 0 : i32
    %c0_i32_0 = arith.constant 0 : i32
    %c0_i32_1 = arith.constant 0 : i32
    return %c0_i32, %c0_i32_0 : i32, i32
  }
  func.func @transform_20(%arg0: i32) -> (i32, i32) {
    %c0_i32 = arith.constant 0 : i32
    %c0_i32_0 = arith.constant 0 : i32
    %c0_i32_1 = arith.constant 0 : i32
    return %c0_i32, %c0_i32_0 : i32, i32
  }
  func.func @transform_21(%arg0: i32) -> (i32, i32) {
    %c0_i32 = arith.constant 0 : i32
    %c0_i32_0 = arith.constant 0 : i32
    %c0_i32_1 = arith.constant 0 : i32
    return %c0_i32, %c0_i32_0 : i32, i32
  }
}

</mosaic_0001>

<bundles_post_ra>
// kernel: fake_top_model_forward.1
= control target key start
LH: loop header
LB: loop body
LE: loop exit
PB: predicated region body
PF: predicated region fallthrough
CT: control target
= control target key end

     0   :  { %s2910_s0 = inlined_call_operand.hbm [shape: f32[8,128], index: 0, kind: input, shape index: {}]   ;;  %s2911_s1 = inlined_call_operand.hbm [shape: f32[8,128], index: 1, kind: input, shape index: {}]   ;;  %s2912_s2 = inlined_call_operand.hbm [shape: f32[1,128], index: 2, kind: input, shape index: {}]   ;;  %s2913_s3 = inlined_call_operand.hbm [shape: f32[1,128], index: 3, kind: input, shape index: {}]   ;;  %s2914_s4 = inlined_call_operand.hbm [shape: f32[1,128], index: 4, kind: input, shape index: {}]   ;;  %s2915_s5 = inlined_call_operand.hbm [shape: f32[1,128], index: 5, kind: input, shape index: {}]   ;;  %s2916_s6 = inlined_call_operand.hbm [shape: bf16[128,128], index: 6, kind: input, shape index: {}]   ;;  %s2917_s7 = inlined_call_operand.hbm [shape: bf16[128,128], index: 7, kind: input, shape index: {}]   ;;  %s2918_s8 = inlined_call_operand.vmem [shape: f32[1,128], index: 8, kind: input, shape index: {}]   ;;  %s2919_s9 = inlined_call_operand.vmem [shape: f32[1,128], index: 9, kind: input, shape index: {}]   ;;  %s2920_s10 = inlined_call_operand.vmem [shape: f32[1,128], index: 10, kind: input, shape index: {}]   ;;  %s2921_s11 = inlined_call_operand.hbm [shape: bf16[128,256], index: 11, kind: input, shape index: {}]   ;;  %s2922_s12 = inlined_call_operand.vmem [shape: f32[1,256], index: 12, kind: input, shape index: {}]   ;;  %s2923_s13 = inlined_call_operand.vmem [shape: f32[1,256], index: 13, kind: input, shape index: {}]   ;;  %s2924_s14 = inlined_call_operand.vmem [shape: f32[1,256], index: 14, kind: input, shape index: {}]   ;;  %s2925_s15 = inlined_call_operand.hbm [shape: bf16[256,512], index: 15, kind: input, shape index: {}]   ;;  %s2926_s16 = inlined_call_operand.vmem [shape: f32[1,512], index: 16, kind: input, shape index: {}]   ;;  %s2927_s17 = inlined_call_operand.vmem [shape: f32[1,512], index: 17, kind: input, shape index: {}]   ;;  %s2928_s18 = inlined_call_operand.vmem [shape: f32[1,512], index: 18, kind: input, shape index: {}]   ;;  %s2929_s19 = inlined_call_operand.hbm [shape: bf16[512,128], index: 19, kind: input, shape index: {}]   ;;  %s2930_s20 = inlined_call_operand.vmem [shape: f32[1,128], index: 20, kind: input, shape index: {}]   ;;  %s2931_s21 = inlined_call_operand.hbm [shape: f32[8,128], index: 21, kind: output, shape index: {}]  }
   0x1   :  { %2943 = sst [smem:[#allocation28_spill]] %s2910_s0 }
   0x2   :  { %2944 = sst [smem:[#allocation29_spill]] %s2911_s1 }
   0x3   :  { %2945 = sst [smem:[#allocation30_spill]] %s2912_s2 }
   0x4   :  { %2946 = sst [smem:[#allocation31_spill]] %s2913_s3 }
   0x5   :  { %2947 = sst [smem:[#allocation32_spill]] %s2914_s4 }
   0x6   :  { %2948 = sst [smem:[#allocation33_spill]] %s2915_s5 }
   0x7   :  { %2949 = sst [smem:[#allocation34_spill]] %s2931_s21 }
   0x8   :  { %26 = vsyncpa [#allocation3], 0 }
   0x9   :  { %27 = vsyncpa [#allocation6], 0 }
   0xa   :  { %28 = vsyncpa [#allocation9], 0 }
   0xb   :  { %29 = vsyncpa [#allocation12], 0 }
   0xc   :  { %30 = vsyncpa [#allocation15], 0 }
   0xd   :  { %31 = vsyncpa [#allocation18], 0 }
   0xe   :  { %32 = vsyncpa [#allocation4], 0  ;;  %s2502_s2 = smov [#allocation5]   ;;  %s2503_s26 = smov [#allocation8]  }
   0xf   :  { %s49_s25 = sshll.u32 %s2502_s2, 4  ;;  %s69_s27 = sshll.u32 %s2503_s26, 4  ;;  %s50_s25 = int_to_ptr.vmem [resolvable:$true] %s49_s25  ;;  %s70_s27 = int_to_ptr.vmem [resolvable:$true] %s69_s27 }
  0x10   :  { %s2950_s29 = sld [smem:[#allocation29_spill]] }
  0x16   :  { %s2224_s0 = scalar_lea.hbm %s2950_s29, 128 }
  0x17   :  { %p2225_p0 = scmp.ne.s32.totalorder %s2950_s29, %s2224_s0  ;;  %p2228_p1 = scmp.lt.u32.totalorder %s2224_s0, %s2950_s29 }
  0x19   :  { %p2230_p2 = pnand %p2228_p1, %p2225_p0 }
  0x1b   :  { %2233 = shalt.err (!%p2230_p2)
}
  0x1c   :  { %s2234_s23 = scalar_lea.vmem %s50_s25, 128  ;;  %p2239_p4 = scmp.lt.s32.totalorder %s50_s25, %s50_s25 }
  0x1d   :  { %p2235_p3 = scmp.ne.s32.totalorder %s50_s25, %s2234_s23  ;;  %p2240_p5 = scmp.lt.s32.totalorder %s2234_s23, %s2234_s23 }
  0x1f   :  { %p2241_p6 = por %p2240_p5, %p2239_p4 }
  0x21   :  { %p2242_p7 = pnand %p2241_p6, %p2235_p3 }
  0x23   :  { %2245 = shalt.err (!%p2242_p7)
}
  0x24   :  { %52 = dma.hbm_to_vmem [thread:$0]  %s2950_s29, 128, %s50_s25, [#allocation6]  }
  0x25   :  { %s2951_s3 = sld [smem:[#allocation31_spill]] }
  0x2b   :  { %s2246_s28 = scalar_lea.hbm %s2951_s3, 16 }
  0x2c   :  { %p2247_p8 = scmp.ne.s32.totalorder %s2951_s3, %s2246_s28  ;;  %p2250_p9 = scmp.lt.u32.totalorder %s2246_s28, %s2951_s3 }
  0x2e   :  { %p2252_p10 = pnand %p2250_p9, %p2247_p8 }
  0x30   :  { %2255 = shalt.err (!%p2252_p10)
}
  0x31   :  { %s2256_s22 = scalar_lea.vmem %s70_s27, 16  ;;  %s2260_s23 = scalar_lea.vmem %s70_s27, 32 }
  0x32   :  { %p2257_p11 = scmp.ne.s32.totalorder %s70_s27, %s2256_s22  ;;  %p2261_p12 = scmp.lt.s32.totalorder %s70_s27, %s70_s27 }
  0x33   :  { %p2262_p13 = scmp.lt.s32.totalorder %s2260_s23, %s2256_s22 }
  0x35   :  { %p2263_p0 = por %p2262_p13, %p2261_p12 }
  0x37   :  { %p2264_p1 = pnand %p2263_p0, %p2257_p11 }
  0x39   :  { %2267 = shalt.err (!%p2264_p1)
}
  0x3a   :  { %72 = dma.hbm_to_vmem [thread:$0]  %s2951_s3, 16, %s70_s27, [#allocation9]  }
  0x3b   :  { %s2504_s1 = smov [#allocation11]   ;;  %s2952_s28 = sld [smem:[#allocation33_spill]] }
  0x3c   :  { %s89_s24 = sshll.u32 %s2504_s1, 4  ;;  %s90_s24 = int_to_ptr.vmem [resolvable:$true] %s89_s24 }
  0x41   :  { %s2268_s4 = scalar_lea.hbm %s2952_s28, 16 }
  0x42   :  { %p2269_p2 = scmp.ne.s32.totalorder %s2952_s28, %s2268_s4  ;;  %p2272_p3 = scmp.lt.u32.totalorder %s2268_s4, %s2952_s28 }
  0x44   :  { %p2274_p4 = pnand %p2272_p3, %p2269_p2 }
  0x46   :  { %2277 = shalt.err (!%p2274_p4)
}
  0x47   :  { %s2278_s23 = scalar_lea.vmem %s90_s24, 16  ;;  %s2282_s27 = scalar_lea.vmem %s90_s24, 32 }
  0x48   :  { %p2279_p5 = scmp.ne.s32.totalorder %s90_s24, %s2278_s23  ;;  %p2283_p6 = scmp.lt.s32.totalorder %s90_s24, %s90_s24 }
  0x49   :  { %p2284_p7 = scmp.lt.s32.totalorder %s2282_s27, %s2278_s23 }
  0x4b   :  { %p2285_p8 = por %p2284_p7, %p2283_p6 }
  0x4d   :  { %p2286_p9 = pnand %p2285_p8, %p2279_p5 }
  0x4f   :  { %2289 = shalt.err (!%p2286_p9)
}
  0x50   :  { %92 = dma.hbm_to_vmem [thread:$0]  %s2952_s28, 16, %s90_s24, [#allocation12]  }
  0x51   :  { %s2505_s29 = smov [#allocation14]   ;;  %s2506_s2 = smov [#allocation17]  }
  0x52   :  { %s110_s1 = sshll.u32 %s2505_s29, 4  ;;  %s146_s26 = sshll.u32 %s2506_s2, 4  ;;  %s111_s1 = int_to_ptr.vmem [resolvable:$true] %s110_s1  ;;  %s147_s26 = int_to_ptr.vmem [resolvable:$true] %s146_s26 }
  0x53   :  { %s2290_s0 = scalar_lea.hbm %s2917_s7, 1024 }
  0x54   :  { %p2291_p10 = scmp.ne.s32.totalorder %s2917_s7, %s2290_s0  ;;  %p2294_p11 = scmp.lt.u32.totalorder %s2290_s0, %s2917_s7 }
  0x56   :  { %p2296_p12 = pnand %p2294_p11, %p2291_p10 }
  0x58   :  { %2299 = shalt.err (!%p2296_p12)
}
  0x59   :  { %s2300_s24 = scalar_lea.vmem %s111_s1, 1024  ;;  %p2305_p0 = scmp.lt.s32.totalorder %s111_s1, %s111_s1 }
  0x5a   :  { %p2301_p13 = scmp.ne.s32.totalorder %s111_s1, %s2300_s24  ;;  %p2306_p1 = scmp.lt.s32.totalorder %s2300_s24, %s2300_s24 }
  0x5c   :  { %p2307_p2 = por %p2306_p1, %p2305_p0 }
  0x5e   :  { %p2308_p3 = pnand %p2307_p2, %p2301_p13 }
  0x60   :  { %2311 = shalt.err (!%p2308_p3)
}
  0x61   :  { %s2938_s28 = smov 64   ;;  %s2940_s3 = smov 4  }
  0x62   :  { %116 = dma.hbm_to_vmem [thread:$0]  %s2917_s7, 1024, %s111_s1, [#allocation15], %s2938_s28, %s2938_s28, %s2940_s3  }
  0x63   :  { %s2312_s30 = scalar_lea.hbm %s2925_s15, 8192 }
  0x64   :  { %p2313_p4 = scmp.ne.s32.totalorder %s2925_s15, %s2312_s30  ;;  %p2316_p5 = scmp.lt.u32.totalorder %s2312_s30, %s2925_s15 }
  0x66   :  { %p2318_p6 = pnand %p2316_p5, %p2313_p4 }
  0x68   :  { %2321 = shalt.err (!%p2318_p6)
}
  0x69   :  { %s2322_s27 = scalar_lea.vmem %s147_s26, 8192  ;;  %p2327_p8 = scmp.lt.s32.totalorder %s147_s26, %s147_s26 }
  0x6a   :  { %p2323_p7 = scmp.ne.s32.totalorder %s147_s26, %s2322_s27  ;;  %p2328_p9 = scmp.lt.s32.totalorder %s2322_s27, %s2322_s27 }
  0x6c   :  { %p2329_p10 = por %p2328_p9, %p2327_p8 }
  0x6e   :  { %p2330_p11 = pnand %p2329_p10, %p2323_p7 }
  0x70   :  { %2333 = shalt.err (!%p2330_p11)
}
  0x71   :  { %s2509_s7 = smov 256   ;;  %s2510_s1 = smov 16  }
  0x72   :  { %152 = dma.hbm_to_vmem [thread:$0]  %s2925_s15, 8192, %s147_s26, [#allocation18], %s2509_s7, %s2509_s7, %s2510_s1  }
  0x73   :  { %s2511_s29 = smov [#allocation2]   ;;  %s2512_s4 = smov [#allocation7]  }
  0x74   :  { %s39_s2 = sshll.u32 %s2511_s29, 4  ;;  %s59_s30 = sshll.u32 %s2512_s4, 4  ;;  %s40_s2 = int_to_ptr.vmem [resolvable:$true] %s39_s2  ;;  %s60_s30 = int_to_ptr.vmem [resolvable:$true] %s59_s30 }
  0x75   :  { %s2953_s22 = sld [smem:[#allocation28_spill]] }
  0x7b   :  { %s2334_s23 = scalar_lea.hbm %s2953_s22, 128 }
  0x7c   :  { %p2335_p12 = scmp.ne.s32.totalorder %s2953_s22, %s2334_s23  ;;  %p2338_p13 = scmp.lt.u32.totalorder %s2334_s23, %s2953_s22 }
  0x7e   :  { %p2340_p0 = pnand %p2338_p13, %p2335_p12 }
  0x80   :  { %2343 = shalt.err (!%p2340_p0)
}
  0x81   :  { %s2344_s15 = scalar_lea.vmem %s40_s2, 128  ;;  %p2349_p2 = scmp.lt.s32.totalorder %s40_s2, %s40_s2 }
  0x82   :  { %p2345_p1 = scmp.ne.s32.totalorder %s40_s2, %s2344_s15  ;;  %p2350_p3 = scmp.lt.s32.totalorder %s2344_s15, %s2344_s15 }
  0x84   :  { %p2351_p4 = por %p2350_p3, %p2349_p2 }
  0x86   :  { %p2352_p5 = pnand %p2351_p4, %p2345_p1 }
  0x88   :  { %2355 = shalt.err (!%p2352_p5)
}
  0x89   :  { %42 = dma.hbm_to_vmem [thread:$0]  %s2953_s22, 128, %s40_s2, [#allocation3]  }
  0x8a   :  { %s2954_s24 = sld [smem:[#allocation30_spill]] }
  0x90   :  { %s2356_s25 = scalar_lea.hbm %s2954_s24, 16 }
  0x91   :  { %p2357_p6 = scmp.ne.s32.totalorder %s2954_s24, %s2356_s25  ;;  %p2360_p7 = scmp.lt.u32.totalorder %s2356_s25, %s2954_s24 }
  0x93   :  { %p2362_p8 = pnand %p2360_p7, %p2357_p6 }
  0x95   :  { %2365 = shalt.err (!%p2362_p8)
}
  0x96   :  { %s2366_s0 = scalar_lea.vmem %s60_s30, 16  ;;  %s2370_s5 = scalar_lea.vmem %s60_s30, 32 }
  0x97   :  { %p2367_p9 = scmp.ne.s32.totalorder %s60_s30, %s2366_s0  ;;  %p2371_p10 = scmp.lt.s32.totalorder %s60_s30, %s60_s30 }
  0x98   :  { %p2372_p11 = scmp.lt.s32.totalorder %s2370_s5, %s2366_s0 }
  0x9a   :  { %p2373_p12 = por %p2372_p11, %p2371_p10 }
  0x9c   :  { %p2374_p13 = pnand %p2373_p12, %p2367_p9 }
  0x9e   :  { %2377 = shalt.err (!%p2374_p13)
}
  0x9f   :  { %62 = dma.hbm_to_vmem [thread:$0]  %s2954_s24, 16, %s60_s30, [#allocation6]  }
  0xa0   :  { %s2513_s23 = smov [#allocation10]   ;;  %s2514_s15 = smov [#allocation13]  }
  0xa1   :  { %s79_s27 = sshll.u32 %s2513_s23, 4  ;;  %s98_s26 = sshll.u32 %s2514_s15, 4  ;;  %s80_s27 = int_to_ptr.vmem [resolvable:$true] %s79_s27  ;;  %s99_s26 = int_to_ptr.vmem [resolvable:$true] %s98_s26 }
  0xa2   :  { %s2955_s1 = sld [smem:[#allocation32_spill]] }
  0xa8   :  { %s2378_s25 = scalar_lea.hbm %s2955_s1, 16 }
  0xa9   :  { %p2379_p0 = scmp.ne.s32.totalorder %s2955_s1, %s2378_s25  ;;  %p2382_p1 = scmp.lt.u32.totalorder %s2378_s25, %s2955_s1 }
  0xab   :  { %p2384_p2 = pnand %p2382_p1, %p2379_p0 }
  0xad   :  { %2387 = shalt.err (!%p2384_p2)
}
  0xae   :  { %s2388_s30 = scalar_lea.vmem %s80_s27, 16  ;;  %s2392_s24 = scalar_lea.vmem %s80_s27, 32 }
  0xaf   :  { %p2389_p3 = scmp.ne.s32.totalorder %s80_s27, %s2388_s30  ;;  %p2393_p4 = scmp.lt.s32.totalorder %s80_s27, %s80_s27 }
  0xb0   :  { %p2394_p5 = scmp.lt.s32.totalorder %s2392_s24, %s2388_s30 }
  0xb2   :  { %p2395_p6 = por %p2394_p5, %p2393_p4 }
  0xb4   :  { %p2396_p7 = pnand %p2395_p6, %p2389_p3 }
  0xb6   :  { %2399 = shalt.err (!%p2396_p7)
}
  0xb7   :  { %82 = dma.hbm_to_vmem [thread:$0]  %s2955_s1, 16, %s80_s27, [#allocation9]  }
  0xb8   :  { %s2400_s23 = scalar_lea.hbm %s2916_s6, 1024 }
  0xb9   :  { %p2401_p8 = scmp.ne.s32.totalorder %s2916_s6, %s2400_s23  ;;  %p2404_p9 = scmp.lt.u32.totalorder %s2400_s23, %s2916_s6 }
  0xbb   :  { %p2406_p10 = pnand %p2404_p9, %p2401_p8 }
  0xbd   :  { %2409 = shalt.err (!%p2406_p10)
}
  0xbe   :  { %s2410_s21 = scalar_lea.vmem %s99_s26, 1024  ;;  %p2415_p12 = scmp.lt.s32.totalorder %s99_s26, %s99_s26 }
  0xbf   :  { %p2411_p11 = scmp.ne.s32.totalorder %s99_s26, %s2410_s21  ;;  %p2416_p13 = scmp.lt.s32.totalorder %s2410_s21, %s2410_s21 }
  0xc1   :  { %p2417_p0 = por %p2416_p13, %p2415_p12 }
  0xc3   :  { %p2418_p1 = pnand %p2417_p0, %p2411_p11 }
  0xc5   :  { %2421 = shalt.err (!%p2418_p1)
}
  0xc6   :  { %s2956_s27 = smov 4   ;;  %s2957_s1 = smov 64  }
  0xc7   :  { %104 = dma.hbm_to_vmem [thread:$0]  %s2916_s6, 1024, %s99_s26, [#allocation12], %s2957_s1, %s2957_s1, %s2956_s27  }
  0xc8   :  { %s2515_s4 = smov [#allocation16]   ;;  %s2422_s5 = scalar_lea.hbm %s2921_s11, 2048 }
  0xc9   :  { %s128_s30 = sshll.u32 %s2515_s4, 4  ;;  %p2423_p2 = scmp.ne.s32.totalorder %s2921_s11, %s2422_s5  ;;  %s129_s30 = int_to_ptr.vmem [resolvable:$true] %s128_s30 }
  0xca   :  { %p2426_p3 = scmp.lt.u32.totalorder %s2422_s5, %s2921_s11 }
  0xcc   :  { %p2428_p4 = pnand %p2426_p3, %p2423_p2 }
  0xce   :  { %2431 = shalt.err (!%p2428_p4)
}
  0xcf   :  { %s2432_s7 = scalar_lea.vmem %s129_s30, 2048  ;;  %p2437_p6 = scmp.lt.s32.totalorder %s129_s30, %s129_s30 }
  0xd0   :  { %p2433_p5 = scmp.ne.s32.totalorder %s129_s30, %s2432_s7  ;;  %p2438_p7 = scmp.lt.s32.totalorder %s2432_s7, %s2432_s7 }
  0xd2   :  { %p2439_p8 = por %p2438_p7, %p2437_p6 }
  0xd4   :  { %p2440_p9 = pnand %p2439_p8, %p2433_p5 }
  0xd6   :  { %2443 = shalt.err (!%p2440_p9)
}
  0xd7   :  { %s2516_s6 = smov 128   ;;  %s2517_s26 = smov 8  }
  0xd8   :  { %134 = dma.hbm_to_vmem [thread:$0]  %s2921_s11, 2048, %s129_s30, [#allocation15], %s2516_s6, %s2516_s6, %s2517_s26  }
  0xd9   :  { %s2518_s21 = smov [#allocation19]   ;;  %s2444_s24 = scalar_lea.hbm %s2929_s19, 4096 }
  0xda   :  { %s164_s3 = sshll.u32 %s2518_s21, 4  ;;  %p2445_p10 = scmp.ne.s32.totalorder %s2929_s19, %s2444_s24  ;;  %s165_s3 = int_to_ptr.vmem [resolvable:$true] %s164_s3 }
  0xdb   :  { %p2448_p11 = scmp.lt.u32.totalorder %s2444_s24, %s2929_s19 }
  0xdd   :  { %p2450_p12 = pnand %p2448_p11, %p2445_p10 }
  0xdf   :  { %2453 = shalt.err (!%p2450_p12)
}
  0xe0   :  { %s2454_s23 = scalar_lea.vmem %s165_s3, 4096  ;;  %p2459_p0 = scmp.lt.s32.totalorder %s165_s3, %s165_s3 }
  0xe1   :  { %p2455_p13 = scmp.ne.s32.totalorder %s165_s3, %s2454_s23  ;;  %p2460_p1 = scmp.lt.s32.totalorder %s2454_s23, %s2454_s23 }
  0xe3   :  { %p2461_p2 = por %p2460_p1, %p2459_p0 }
  0xe5   :  { %p2462_p3 = pnand %p2461_p2, %p2455_p13 }
  0xe7   :  { %2465 = shalt.err (!%p2462_p3)
}
  0xe8   :  { %170 = dma.hbm_to_vmem [thread:$0]  %s2929_s19, 4096, %s165_s3, [#allocation18], %s2957_s1, %s2957_s1, %s2956_s27  }
  0xe9   :  { %2488 = dma.done.wait [#allocation3], 128  }
  0xea   :  { %2489 = vsyncadd [#allocation3], 4294967168 }
  0xeb   :  { %2490 = dma.done.wait [#allocation6], 144  }
  0xec   :  { %2491 = vsyncadd [#allocation6], 4294967152 }
  0xed   :  { %2492 = dma.done.wait [#allocation9], 32  }
  0xee   :  { %2493 = vsyncadd [#allocation9], 4294967264 }
  0xef   :  { %2494 = dma.done.wait [#allocation12], 1040  }
  0xf0   :  { %2495 = vsyncadd [#allocation12], 4294966256 }
  0xf1   :  { %2496 = dma.done.wait [#allocation15], 3072  }
  0xf2   :  { %2497 = vsyncadd [#allocation15], 4294964224 }
  0xf3   :  { %2498 = dma.done.wait [#allocation18], 12288  }
  0xf4   :  { %2499 = vsyncadd [#allocation18], 4294955008  ;;  %v2519_v0 = vmov 0.0   ;;  %vm2520_vm0 = vmmov 0   ;;  %v2034_v1 = vld [vmem:[#allocation14] sm:$0xff]   ;;  %v2036_v3 = vld [vmem:[#allocation14 + $0x8] sm:$0xff]  }
  0xf5   :  { %1973 = vmatprep.subr.bf16.mxu0 %v2519_v0  ;;  %1993 = vmatprep.subr.bf16.mxu1 %v2519_v0  ;;  %v2035_v2 = vld [vmem:[#allocation13] sm:$0xff]   ;;  %v2037_v4 = vld [vmem:[#allocation13 + $0x8] sm:$0xff]   ;;  %v2038_v5 = vld [vmem:[#allocation14 + $0x10] sm:$0xff]  }
  0xf6   :  { %1989 = vmatprep.mubr.msk.bf16.mxu0 %vm2520_vm0, %v2519_v0  ;;  %2009 = vmatprep.mubr.msk.bf16.mxu1 %vm2520_vm0, %v2519_v0  ;;  %v2039_v6 = vld [vmem:[#allocation13 + $0x10] sm:$0xff]   ;;  %v2040_v7 = vld [vmem:[#allocation14 + $0x18] sm:$0xff]   ;;  %v2042_v9 = vld [vmem:[#allocation14 + $0x20] sm:$0xff]  }
  0xf7   :  { %1974 = vmatpush3.bf16.msra.mxu0 %v2034_v1  ;;  %1994 = vmatpush3.bf16.msra.mxu1 %v2035_v2  ;;  %v2041_v8 = vld [vmem:[#allocation13 + $0x18] sm:$0xff]   ;;  %v2043_v10 = vld [vmem:[#allocation13 + $0x20] sm:$0xff]   ;;  %v2786_v11 = vld [vmem:[#allocation5] sm:$0xff] }
  0xf8   :  { %1975 = vmatprep.subr.bf16.mxu0 %v2519_v0  ;;  %1995 = vmatprep.subr.bf16.mxu1 %v2519_v0  ;;  %v2044_v12 = vld [vmem:[#allocation14 + $0x28] sm:$0xff]   ;;  %v249_v14 = vrot.slane %v2786_v11, 4  ;;  %v256_v15 = vmul.f32 %v2786_v11, %v2786_v11  ;;  %v2046_v21 = vld [vmem:[#allocation14 + $0x30] sm:$0xff]   ;;  %v2048_v31 = vld [vmem:[#allocation14 + $0x38] sm:$0xff]  }
  0xf9   :  { %v2045_v13 = vld [vmem:[#allocation13 + $0x28] sm:$0xff]   ;;  %v2047_v24 = vld [vmem:[#allocation13 + $0x30] sm:$0xff]   ;;  %v2049_v34 = vld [vmem:[#allocation13 + $0x38] sm:$0xff]  }
  0xfa   :  { %v2791_v16 = vld [vmem:[#allocation2] sm:$0xff]  ;;  %v250_v19 = vadd.f32 %v249_v14, %v2786_v11  ;;  %v257_v20 = vrot.slane %v256_v15, 4  ;;  %v1777_v56 = vld [vmem:[#allocation10] ss:$0 sm:$0xff]  ;;  %v1775_v58 = vld [vmem:[#allocation7] ss:$0 sm:$0xff] }
  0xfb   :  { %1976 = vmatpush3.bf16.msra.mxu0 %v2036_v3  ;;  %1996 = vmatpush3.bf16.msra.mxu1 %v2037_v4  ;;  %v211_v17 = vrot.slane %v2791_v16, 4  ;;  %v218_v18 = vmul.f32 %v2791_v16, %v2791_v16  ;;  %v1778_v60 = vld [vmem:[#allocation11] ss:$0 sm:$0xff]  ;;  %v1776_v63 = vld [vmem:[#allocation8] ss:$0 sm:$0xff] }
  0xfc   :  { %1977 = vmatprep.subr.bf16.mxu0 %v2519_v0  ;;  %1997 = vmatprep.subr.bf16.mxu1 %v2519_v0  ;;  %v251_v25 = vrot.slane %v250_v19, 2  ;;  %v258_v26 = vadd.f32 %v257_v20, %v256_v15  ;;  %v2056_v14 = vld [vmem:[#allocation16 + $0x20] ss:$8 sps:$4 sm:$0xff]   ;;  %v2061_v15 = vld [vmem:[#allocation16 + $0x34] ss:$8 sps:$4 sm:$0xff]   ;;  %v2521_v20 = vmov 0  }
  0xfd   :  { %v212_v22 = vadd.f32 %v211_v17, %v2791_v16  ;;  %v219_v23 = vrot.slane %v218_v18, 4  ;;  %v2064_v17 = vld [vmem:[#allocation16 + $0x44] ss:$8 sps:$4 sm:$0xff]  }
  0xfe   :  { %v252_v29 = vadd.f32 %v251_v25, %v250_v19  ;;  %v259_v30 = vrot.slane %v258_v26, 2  ;;  %v2067_v19 = vld [vmem:[#allocation16 + $0x54] ss:$8 sps:$4 sm:$0xff]   ;;  %v2071_v25 = vld [vmem:[#allocation16 + $0x70] ss:$8 sps:$4 sm:$0xff]  }
  0xff   :  { %1978 = vmatpush3.bf16.msra.mxu0 %v2038_v5  ;;  %1998 = vmatpush3.bf16.msra.mxu1 %v2039_v6  ;;  %v213_v27 = vrot.slane %v212_v22, 2  ;;  %v220_v28 = vadd.f32 %v219_v23, %v218_v18  ;;  %v2062_v18 = vld [vmem:[#allocation16 + $0x40] ss:$8 sps:$4 sm:$0xff]  }
 0x100   :  { %1979 = vmatprep.subr.bf16.mxu0 %v2519_v0  ;;  %1999 = vmatprep.subr.bf16.mxu1 %v2519_v0  ;;  %v253_v35 = vrot.slane %v252_v29, 1  ;;  %v260_v36 = vadd.f32 %v259_v30, %v258_v26  ;;  %v2068_v23 = vld [vmem:[#allocation16 + $0x60] ss:$8 sps:$4 sm:$0xff]  }
 0x101   :  { %v214_v32 = vadd.f32 %v213_v27, %v212_v22  ;;  %v221_v33 = vrot.slane %v220_v28, 2  ;;  %v2070_v22 = vld [vmem:[#allocation16 + $0x64] ss:$8 sps:$4 sm:$0xff]   ;;  %v2074_v26 = vld [vmem:[#allocation17] ss:$16 sps:$4 sm:$0xff]  }
 0x102   :  { %v254_v39 = vadd.f32 %v253_v35, %v252_v29  ;;  %v261_v40 = vrot.slane %v260_v36, 1  ;;  %v2076_v27 = vld [vmem:[#allocation17 + $0x4] ss:$16 sps:$4 sm:$0xff]   ;;  %v2080_v30 = vld [vmem:[#allocation17 + $0x20] ss:$16 sps:$4 sm:$0xff]  }
 0x103   :  { %1980 = vmatpush3.bf16.msra.mxu0 %v2040_v7  ;;  %2000 = vmatpush3.bf16.msra.mxu1 %v2041_v8  ;;  %v215_v37 = vrot.slane %v214_v32, 1  ;;  %v222_v38 = vadd.f32 %v221_v33, %v220_v28  ;;  %v2079_v28 = vld [vmem:[#allocation17 + $0xc] ss:$16 sps:$4 sm:$0xff]   ;;  %v2082_v29 = vld [vmem:[#allocation17 + $0x24] ss:$16 sps:$4 sm:$0xff]  }
 0x104   :  { %1981 = vmatprep.subr.bf16.mxu0 %v2519_v0  ;;  %2001 = vmatprep.subr.bf16.mxu1 %v2519_v0  ;;  %v255_v43 = vmul.f32 0.125, %v254_v39  ;;  %v262_v44 = vadd.f32 %v261_v40, %v260_v36  ;;  %v2094_v33 = vld [vmem:[#allocation17 + $0x64] ss:$16 sps:$4 sm:$0xff]   ;;  %v2098_v36 = vld [vmem:[#allocation17 + $0x80] ss:$16 sps:$4 sm:$0xff]  }
 0x105   :  { %v216_v41 = vadd.f32 %v215_v37, %v214_v32  ;;  %v223_v42 = vrot.slane %v222_v38, 1  ;;  %v2086_v32 = vld [vmem:[#allocation17 + $0x40] ss:$16 sps:$4 sm:$0xff]   ;;  %v2100_v35 = vld [vmem:[#allocation17 + $0x84] ss:$16 sps:$4 sm:$0xff]  }
 0x106   :  { %v263_v47 = vmul.f32 0.125, %v262_v44  ;;  %v264_v48 = vmul.f32 %v255_v43, %v255_v43  ;;  %v266_v55 = vsub.f32 %v2786_v11, %v255_v43  ;;  %v2055_v11 = vld [vmem:[#allocation16 + $0x14] ss:$8 sps:$4 sm:$0xff]   ;;  %v1795_v39 = vld [vmem:[%s2918_s8] ss:$0 sm:$0xff] }
 0x107   :  { %1982 = vmatpush3.bf16.msra.mxu0 %v2042_v9  ;;  %2002 = vmatpush3.bf16.msra.mxu1 %v2043_v10  ;;  %v217_v45 = vmul.f32 0.125, %v216_v41  ;;  %v224_v46 = vadd.f32 %v223_v42, %v222_v38  ;;  %v2052_v9 = vld [vmem:[#allocation16 + $0x4] ss:$8 sps:$4 sm:$0xff]   ;;  %v2050_v10 = vld [vmem:[#allocation16] ss:$8 sps:$4 sm:$0xff]  }
 0x108   :  { %1983 = vmatprep.subr.bf16.mxu0 %v2519_v0  ;;  %2003 = vmatprep.subr.bf16.mxu1 %v2519_v0  ;;  %v265_v51 = vsub.f32 %v263_v47, %v264_v48 }
 0x109   :  { %v225_v49 = vmul.f32 0.125, %v224_v46  ;;  %v226_v50 = vmul.f32 %v217_v45, %v217_v45  ;;  %v228_v57 = vsub.f32 %v2791_v16, %v217_v45  ;;  %v2059_v16 = vld [vmem:[#allocation16 + $0x30] ss:$8 sps:$4 sm:$0xff]  }
 0x10a   :  { %v267_v53 = vadd.f32 1e-05, %v265_v51 }
 0x10b   :  { %1984 = vmatpush3.bf16.msra.mxu0 %v2044_v12  ;;  %2004 = vmatpush3.bf16.msra.mxu1 %v2045_v13  ;;  %v227_v52 = vsub.f32 %v225_v49, %v226_v50  ;;  %v2053_v12 = vld [vmem:[#allocation16 + $0x10] ss:$8 sps:$4 sm:$0xff]   ;;  %v2058_v13 = vld [vmem:[#allocation16 + $0x24] ss:$8 sps:$4 sm:$0xff]  }
 0x10c   :  { %1985 = vmatprep.subr.bf16.mxu0 %v2519_v0  ;;  %2005 = vmatprep.subr.bf16.mxu1 %v2519_v0  ;;  %2202 = vrsqrt.f32 %v267_v53 }
 0x10d   :  { %v229_v54 = vadd.f32 1e-05, %v227_v52 }
 0x10f   :  { %1986 = vmatpush3.bf16.msra.mxu0 %v2046_v21  ;;  %2006 = vmatpush3.bf16.msra.mxu1 %v2047_v24  ;;  %2204 = vrsqrt.f32 %v229_v54  ;;  %v2065_v21 = vld [vmem:[#allocation16 + $0x50] ss:$8 sps:$4 sm:$0xff]   ;;  %v2073_v24 = vld [vmem:[#allocation16 + $0x74] ss:$8 sps:$4 sm:$0xff]  }
 0x110   :  { %1987 = vmatprep.subr.bf16.mxu0 %v2519_v0  ;;  %2007 = vmatprep.subr.bf16.mxu1 %v2519_v0 }
 0x113   :  { %1988 = vmatpush3.bf16.msra.mxu0 %v2048_v31  ;;  %2008 = vmatpush3.bf16.msra.mxu1 %v2049_v34  ;;  %v2088_v31 = vld [vmem:[#allocation17 + $0x44] ss:$16 sps:$4 sm:$0xff]   ;;  %v2092_v34 = vld [vmem:[#allocation17 + $0x60] ss:$16 sps:$4 sm:$0xff]  }
 0x114   :  { %650 = vmatprep.subr.bf16.mxu0 %v2052_v9  ;;  %1171 = vmatprep.subr.bf16.mxu1 %v2076_v27  ;;  %v2113_v27 = vld [vmem:[#allocation17 + $0xc8] ss:$16 sps:$4 sm:$0xff]  }
 0x116   :  { %v2203_v59 = vpop.eup %2202 }
 0x117   :  { %v269_v62 = vmul.f32 %v2203_v59, %v266_v55 }
 0x119   :  { %v2205_v61 = vpop.eup %2204  ;;  %v276_v1 = vmul.f32 %v1777_v56, %v269_v62 }
 0x11a   :  { %v231_v0 = vmul.f32 %v2205_v61, %v228_v57 }
 0x11b   :  { %v283_v3 = vadd.f32 %v1778_v60, %v276_v1 }
 0x11c   :  { %v238_v2 = vmul.f32 %v1775_v58, %v231_v0 }
 0x11d   :  { %v284_v5 = vmax.f32 %v283_v3, 0.0 }
 0x11e   :  { %v245_v4 = vadd.f32 %v1776_v63, %v238_v2 }
 0x11f   :  { %v302_v7 = vpack.c.bf16 %v284_v5, %v284_v5 }
 0x120   :  { %v246_v6 = vmax.f32 %v245_v4, 0.0  ;;  %v1796_v4 = vld [vmem:[%s2919_s9] ss:$0 sm:$0xff] }
 0x121   :  { %1990 = vmatmul.mubr.bf16.vlgmr.msra.gmra.mrb[0].mxu0 %v302_v7 }
 0x122   :  { %v285_v8 = vpack.c.bf16 %v246_v6, %v246_v6  ;;  %651 = vmatpush1.bf16.msra.mxu0 %v2050_v10  ;;  %682 = vmatprep.mubr.bf16.mxu0 %v2521_v20  ;;  %v1797_v6 = vld [vmem:[%s2920_s10] ss:$0 sm:$0xff]  ;;  %v2106_v20 = vld [vmem:[#allocation17 + $0xa4] ss:$16 sps:$4 sm:$0xff]  }
 0x123   :  { %652 = vmatprep.subr.bf16.mxu0 %v2055_v11  ;;  %v2077_v10 = vld [vmem:[#allocation17 + $0x8] ss:$16 sps:$4 sm:$0xff]  }
 0x124   :  { %2010 = vmatmul.mubr.bf16.vlgmr.msra.gmra.mrb[0].mxu1 %v285_v8 }
 0x125   :  { %1172 = vmatpush1.bf16.msra.mxu1 %v2074_v26  ;;  %v2110_v26 = vld [vmem:[#allocation17 + $0xc0] ss:$16 sps:$4 sm:$0xff]  }
 0x126   :  { %653 = vmatpush1.bf16.msra.mxu0 %v2053_v12  ;;  %1173 = vmatprep.subr.bf16.mxu1 %v2082_v29  ;;  %v2085_v12 = vld [vmem:[#allocation17 + $0x2c] ss:$16 sps:$4 sm:$0xff]  }
 0x127   :  { %654 = vmatprep.subr.bf16.mxu0 %v2058_v13  ;;  %v2083_v13 = vld [vmem:[#allocation17 + $0x28] ss:$16 sps:$4 sm:$0xff]   ;;  %v2121_v29 = vld [vmem:[#allocation17 + $0xec] ss:$16 sps:$4 sm:$0xff]  }
 0x129   :  { %1174 = vmatpush1.bf16.msra.mxu1 %v2080_v30  ;;  %v2116_v30 = vld [vmem:[#allocation17 + $0xe0] ss:$16 sps:$4 sm:$0xff]  }
 0x12a   :  { %655 = vmatpush1.bf16.msra.mxu0 %v2056_v14  ;;  %1175 = vmatprep.subr.bf16.mxu1 %v2088_v31  ;;  %v2091_v14 = vld [vmem:[#allocation17 + $0x4c] ss:$16 sps:$4 sm:$0xff]   ;;  %v2119_v31 = vld [vmem:[#allocation17 + $0xe8] ss:$16 sps:$4 sm:$0xff]  }
 0x12b   :  { %656 = vmatprep.subr.bf16.mxu0 %v2061_v15  ;;  %v2089_v15 = vld [vmem:[#allocation17 + $0x48] ss:$16 sps:$4 sm:$0xff]  }
 0x12d   :  { %1176 = vmatpush1.bf16.msra.mxu1 %v2086_v32  ;;  %v2124_v32 = vld [vmem:[#allocation17 + $0x104] ss:$16 sps:$4 sm:$0xff]  }
 0x12e   :  { %657 = vmatpush1.bf16.msra.mxu0 %v2059_v16  ;;  %1177 = vmatprep.subr.bf16.mxu1 %v2094_v33  ;;  %v2097_v16 = vld [vmem:[#allocation17 + $0x6c] ss:$16 sps:$4 sm:$0xff]  }
 0x12f   :  { %658 = vmatprep.subr.bf16.mxu0 %v2064_v17  ;;  %v2095_v17 = vld [vmem:[#allocation17 + $0x68] ss:$16 sps:$4 sm:$0xff]   ;;  %v2127_v33 = vld [vmem:[#allocation17 + $0x10c] ss:$16 sps:$4 sm:$0xff]  }
 0x131   :  { %1178 = vmatpush1.bf16.msra.mxu1 %v2092_v34  ;;  %v2122_v34 = vld [vmem:[#allocation17 + $0x100] ss:$16 sps:$4 sm:$0xff]  }
 0x132   :  { %659 = vmatpush1.bf16.msra.mxu0 %v2062_v18  ;;  %1179 = vmatprep.subr.bf16.mxu1 %v2100_v35  ;;  %v2103_v18 = vld [vmem:[#allocation17 + $0x8c] ss:$16 sps:$4 sm:$0xff]   ;;  %v2125_v35 = vld [vmem:[#allocation17 + $0x108] ss:$16 sps:$4 sm:$0xff]  }
 0x133   :  { %660 = vmatprep.subr.bf16.mxu0 %v2067_v19  ;;  %v2101_v19 = vld [vmem:[#allocation17 + $0x88] ss:$16 sps:$4 sm:$0xff]  }
 0x135   :  { %1180 = vmatpush1.bf16.msra.mxu1 %v2098_v36  ;;  %v2130_v36 = vld [vmem:[#allocation17 + $0x124] ss:$16 sps:$4 sm:$0xff]  }
 0x136   :  { %661 = vmatpush1.bf16.msra.mxu0 %v2065_v21  ;;  %v2109_v21 = vld [vmem:[#allocation17 + $0xac] ss:$16 sps:$4 sm:$0xff]   ;;  %1181 = vmatprep.subr.bf16.mxu1 %v2106_v20 }
 0x137   :  { %662 = vmatprep.subr.bf16.mxu0 %v2070_v22  ;;  %v2104_v22 = vld [vmem:[#allocation17 + $0xa0] ss:$16 sps:$4 sm:$0xff]  }
 0x139   :  { %1182 = vmatpush1.bf16.msra.mxu1 %v2104_v22 }
 0x13a   :  { %663 = vmatpush1.bf16.msra.mxu0 %v2068_v23  ;;  %v2107_v23 = vld [vmem:[#allocation17 + $0xa8] ss:$16 sps:$4 sm:$0xff]  }
 0x13b   :  { %664 = vmatprep.subr.bf16.mxu0 %v2073_v24  ;;  %v2112_v24 = vld [vmem:[#allocation17 + $0xc4] ss:$16 sps:$4 sm:$0xff]  }
 0x13c   :  { %1183 = vmatprep.subr.bf16.mxu1 %v2112_v24 }
 0x13d   :  { %1184 = vmatpush1.bf16.msra.mxu1 %v2110_v26 }
 0x13e   :  { %665 = vmatpush1.bf16.msra.mxu0 %v2071_v25  ;;  %v2115_v25 = vld [vmem:[#allocation17 + $0xcc] ss:$16 sps:$4 sm:$0xff]  }
 0x13f   :  { %1212 = vmatprep.subr.bf16.mxu0 %v2079_v28  ;;  %v2118_v28 = vld [vmem:[#allocation17 + $0xe4] ss:$16 sps:$4 sm:$0xff]  }
 0x140   :  { %1185 = vmatprep.subr.bf16.mxu1 %v2118_v28 }
 0x141   :  { %1186 = vmatpush1.bf16.msra.mxu1 %v2116_v30 }
 0x142   :  { %1187 = vmatprep.subr.bf16.mxu1 %v2124_v32 }
 0x145   :  { %1188 = vmatpush1.bf16.msra.mxu1 %v2122_v34 }
 0x146   :  { %1189 = vmatprep.subr.bf16.mxu1 %v2130_v36 }
 0x1f4   :  { %v401_v37 = vpop.f32.mrb[0].mxu0 }
 0x1f5   :  { %v1991_v40 = vpop.f32.mrb[1].mxu0 }
 0x1f6   :  { %v404_v43 = vpop.f32.mrb[2].mxu0  ;;  %v2136_v40 = vld [vmem:[#allocation17 + $0x144] ss:$16 sps:$4 sm:$0xff]  }
 0x1f7   :  { %v489_v38 = vpop.f32.mrb[0].mxu1  ;;  %v1992_v45 = vpop.f32.mrb[3].mxu0  ;;  %v2137_v43 = vld [vmem:[#allocation17 + $0x148] ss:$16 sps:$4 sm:$0xff]  }
 0x1f8   :  { %v490_v41 = vadd.f32 %v489_v38, %v401_v37  ;;  %v2011_v42 = vpop.f32.mrb[1].mxu1  ;;  %v2133_v37 = vld [vmem:[#allocation17 + $0x12c] ss:$16 sps:$4 sm:$0xff]   ;;  %v2128_v38 = vld [vmem:[#allocation17 + $0x120] ss:$16 sps:$4 sm:$0xff]  }
 0x1f9   :  { %v492_v44 = vpop.f32.mrb[2].mxu1  ;;  %1190 = vmatpush1.bf16.msra.mxu1 %v2128_v38  ;;  %v2134_v42 = vld [vmem:[#allocation17 + $0x140] ss:$16 sps:$4 sm:$0xff]   ;;  %v2145_v45 = vld [vmem:[#allocation17 + $0x16c] ss:$16 sps:$4 sm:$0xff]  }
 0x1fa   :  { %v502_v46 = vadd.f32 %v1795_v39, %v490_v41  ;;  %v2012_v47 = vpop.f32.mrb[3].mxu1  ;;  %v2131_v39 = vld [vmem:[#allocation17 + $0x128] ss:$16 sps:$4 sm:$0xff]   ;;  %v2139_v41 = vld [vmem:[#allocation17 + $0x14c] ss:$16 sps:$4 sm:$0xff]   ;;  %1191 = vmatprep.subr.bf16.mxu1 %v2136_v40 }
 0x1fb   :  { %v2142_v44 = vld [vmem:[#allocation17 + $0x164] ss:$16 sps:$4 sm:$0xff]   ;;  %v2143_v47 = vld [vmem:[#allocation17 + $0x168] ss:$16 sps:$4 sm:$0xff]  }
 0x1fc   :  { %v505_v48 = vrot.slane %v502_v46, 4  ;;  %v512_v49 = vmul.f32 %v502_v46, %v502_v46 }
 0x1fd   :  { %1192 = vmatpush1.bf16.msra.mxu1 %v2134_v42 }
 0x1fe   :  { %v506_v50 = vadd.f32 %v505_v48, %v502_v46  ;;  %v513_v51 = vrot.slane %v512_v49, 4  ;;  %1193 = vmatprep.subr.bf16.mxu1 %v2142_v44  ;;  %v2148_v48 = vld [vmem:[#allocation17 + $0x184] ss:$16 sps:$4 sm:$0xff]  }
 0x200   :  { %v507_v52 = vrot.slane %v506_v50, 2  ;;  %v514_v53 = vadd.f32 %v513_v51, %v512_v49  ;;  %v2151_v49 = vld [vmem:[#allocation17 + $0x18c] ss:$16 sps:$4 sm:$0xff]   ;;  %v2149_v51 = vld [vmem:[#allocation17 + $0x188] ss:$16 sps:$4 sm:$0xff]  }
 0x202   :  { %v508_v54 = vadd.f32 %v507_v52, %v506_v50  ;;  %v515_v55 = vrot.slane %v514_v53, 2  ;;  %v2146_v50 = vld [vmem:[#allocation17 + $0x180] ss:$16 sps:$4 sm:$0xff]   ;;  %v2154_v52 = vld [vmem:[#allocation17 + $0x1a4] ss:$16 sps:$4 sm:$0xff]  }
 0x204   :  { %v509_v56 = vrot.slane %v508_v54, 1  ;;  %v516_v57 = vadd.f32 %v515_v55, %v514_v53  ;;  %v2157_v53 = vld [vmem:[#allocation17 + $0x1ac] ss:$16 sps:$4 sm:$0xff]   ;;  %v2155_v55 = vld [vmem:[#allocation17 + $0x1a8] ss:$16 sps:$4 sm:$0xff]  }
 0x206   :  { %v510_v58 = vadd.f32 %v509_v56, %v508_v54  ;;  %v517_v59 = vrot.slane %v516_v57, 1  ;;  %v2152_v54 = vld [vmem:[#allocation17 + $0x1a0] ss:$16 sps:$4 sm:$0xff]   ;;  %v2160_v56 = vld [vmem:[#allocation17 + $0x1c4] ss:$16 sps:$4 sm:$0xff]  }
 0x208   :  { %v511_v60 = vmul.f32 0.125, %v510_v58  ;;  %v518_v61 = vadd.f32 %v517_v59, %v516_v57  ;;  %v2158_v57 = vld [vmem:[#allocation17 + $0x1c0] ss:$16 sps:$4 sm:$0xff]   ;;  %v2161_v58 = vld [vmem:[#allocation17 + $0x1c8] ss:$16 sps:$4 sm:$0xff]  }
 0x209   :  { %v2163_v59 = vld [vmem:[#allocation17 + $0x1cc] ss:$16 sps:$4 sm:$0xff]  }
 0x20a   :  { %v519_v62 = vmul.f32 0.125, %v518_v61  ;;  %v520_v63 = vmul.f32 %v511_v60, %v511_v60  ;;  %v522_v2 = vsub.f32 %v502_v46, %v511_v60  ;;  %v2140_v46 = vld [vmem:[#allocation17 + $0x160] ss:$16 sps:$4 sm:$0xff]   ;;  %v2166_v60 = vld [vmem:[#allocation17 + $0x1e4] ss:$16 sps:$4 sm:$0xff]  }
 0x20b   :  { %1194 = vmatpush1.bf16.msra.mxu1 %v2140_v46  ;;  %v2169_v61 = vld [vmem:[#allocation17 + $0x1ec] ss:$16 sps:$4 sm:$0xff]  }
 0x20c   :  { %v521_v0 = vsub.f32 %v519_v62, %v520_v63  ;;  %1195 = vmatprep.subr.bf16.mxu1 %v2148_v48  ;;  %v2164_v62 = vld [vmem:[#allocation17 + $0x1e0] ss:$16 sps:$4 sm:$0xff]   ;;  %v2167_v63 = vld [vmem:[#allocation17 + $0x1e8] ss:$16 sps:$4 sm:$0xff]  }
 0x20e   :  { %v523_v1 = vadd.f32 1e-05, %v521_v0  ;;  %v560_v0 = vlaneseq }
 0x20f   :  { %1196 = vmatpush1.bf16.msra.mxu1 %v2146_v50  ;;  %v692_v50 = vld [vmem:[%s2924_s14] sm:$0x3] }
 0x210   :  { %2206 = vrsqrt.f32 %v523_v1  ;;  %1197 = vmatprep.subr.bf16.mxu1 %v2154_v52  ;;  %v2816_v1 = vshrl.u32 %v560_v0, 7 }
 0x213   :  { %1198 = vmatpush1.bf16.msra.mxu1 %v2152_v54 }
 0x214   :  { %1199 = vmatprep.subr.bf16.mxu1 %v2160_v56 }
 0x217   :  { %1200 = vmatpush1.bf16.msra.mxu1 %v2158_v57 }
 0x218   :  { %1201 = vmatprep.subr.bf16.mxu1 %v2166_v60 }
 0x21a   :  { %v2207_v3 = vpop.eup %2206 }
 0x21b   :  { %v525_v5 = vmul.f32 %v2207_v3, %v522_v2  ;;  %1202 = vmatpush1.bf16.msra.mxu1 %v2164_v62  ;;  %v2819_v2 = vsub.s32 0, %v2816_v1  ;;  %v558_v3 = vld [vmem:[%s2922_s12] sm:$0x3] }
 0x21d   :  { %v532_v7 = vmul.f32 %v1796_v4, %v525_v5  ;;  %v2825_v4 = vsub.s32 1, %v2816_v1  ;;  %v563_v5 = vrot.slane %v558_v3, %v2819_v2 }
 0x21f   :  { %v539_v8 = vadd.f32 %v1797_v6, %v532_v7  ;;  %v567_v6 = vrot.slane %v558_v3, %v2825_v4  ;;  %v756_v60 = vrot.slane %v692_v50, %v2825_v4 }
 0x221   :  { %v540_v9 = vmax.f32 %v539_v8, 0.0 }
 0x223   :  { %v541_v11 = vpack.c.bf16 %v540_v9, %v540_v9 }
 0x225   :  { %683 = vmatmul.mubr.bf16.vlgmr.msra.gmra.mrb[4].mxu0 %v541_v11 }
 0x226   :  { %1213 = vmatpush1.bf16.msra.mxu0 %v2077_v10 }
 0x227   :  { %1214 = vmatprep.subr.bf16.mxu0 %v2085_v12 }
 0x22a   :  { %1215 = vmatpush1.bf16.msra.mxu0 %v2083_v13 }
 0x22b   :  { %1216 = vmatprep.subr.bf16.mxu0 %v2091_v14 }
 0x22e   :  { %1217 = vmatpush1.bf16.msra.mxu0 %v2089_v15 }
 0x22f   :  { %1218 = vmatprep.subr.bf16.mxu0 %v2097_v16 }
 0x232   :  { %1219 = vmatpush1.bf16.msra.mxu0 %v2095_v17 }
 0x233   :  { %1220 = vmatprep.subr.bf16.mxu0 %v2103_v18 }
 0x236   :  { %1221 = vmatpush1.bf16.msra.mxu0 %v2101_v19 }
 0x237   :  { %1222 = vmatprep.subr.bf16.mxu0 %v2109_v21 }
 0x23a   :  { %1223 = vmatpush1.bf16.msra.mxu0 %v2107_v23 }
 0x23b   :  { %1224 = vmatprep.subr.bf16.mxu0 %v2115_v25 }
 0x23e   :  { %1225 = vmatpush1.bf16.msra.mxu0 %v2113_v27 }
 0x23f   :  { %1226 = vmatprep.subr.bf16.mxu0 %v2121_v29 }
 0x242   :  { %1227 = vmatpush1.bf16.msra.mxu0 %v2119_v31 }
 0x243   :  { %1228 = vmatprep.subr.bf16.mxu0 %v2127_v33 }
 0x246   :  { %1229 = vmatpush1.bf16.msra.mxu0 %v2125_v35 }
 0x247   :  { %1230 = vmatprep.subr.bf16.mxu0 %v2133_v37 }
 0x24a   :  { %1231 = vmatpush1.bf16.msra.mxu0 %v2131_v39 }
 0x24b   :  { %1232 = vmatprep.subr.bf16.mxu0 %v2139_v41 }
 0x24e   :  { %1233 = vmatpush1.bf16.msra.mxu0 %v2137_v43 }
 0x24f   :  { %1234 = vmatprep.subr.bf16.mxu0 %v2145_v45 }
 0x252   :  { %1235 = vmatpush1.bf16.msra.mxu0 %v2143_v47 }
 0x253   :  { %1236 = vmatprep.subr.bf16.mxu0 %v2151_v49  ;;  %v691_v49 = vld [vmem:[%s2923_s13] sm:$0x3] }
 0x254   :  { %v739_v52 = vrot.slane %v691_v49, %v2819_v2 }
 0x256   :  { %1237 = vmatpush1.bf16.msra.mxu0 %v2149_v51 }
 0x257   :  { %1238 = vmatprep.subr.bf16.mxu0 %v2157_v53 }
 0x25a   :  { %1239 = vmatpush1.bf16.msra.mxu0 %v2155_v55  ;;  %v743_v55 = vrot.slane %v691_v49, %v2825_v4 }
 0x25b   :  { %1240 = vmatprep.subr.bf16.mxu0 %v2163_v59 }
 0x25e   :  { %1241 = vmatpush1.bf16.msra.mxu0 %v2161_v58  ;;  %v752_v58 = vrot.slane %v692_v50, %v2819_v2 }
 0x25f   :  { %1242 = vmatprep.subr.bf16.mxu0 %v2169_v61 }
 0x262   :  { %1243 = vmatpush1.bf16.msra.mxu0 %v2167_v63 }
 0x2f8   :  { %v684_v7 = vpop.f32.mrb[4].mxu0 }
 0x2f9   :  { %v685_v8 = vadd.f32 %v684_v7, %v563_v5  ;;  %v686_v9 = vpop.f32.mrb[5].mxu0 }
 0x2fa   :  { %v687_v10 = vadd.f32 %v686_v9, %v567_v6  ;;  %v688_v11 = vpop.f32.mrb[6].mxu0  ;;  %v2170_v9 = vld [vmem:[#allocation19 + $0x40] sm:$0xff]  }
 0x2fb   :  { %v693_v12 = vrot.slane %v685_v8, 4  ;;  %v707_v13 = vmul.f32 %v685_v8, %v685_v8  ;;  %v689_v14 = vpop.f32.mrb[7].mxu0  ;;  %v2172_v11 = vld [vmem:[#allocation19] sm:$0xff]   ;;  %1929 = vmatprep.subr.bf16.mxu1 %v2170_v9 }
 0x2fc   :  { %v699_v15 = vrot.slane %v687_v10, 4  ;;  %v708_v16 = vmul.f32 %v687_v10, %v687_v10  ;;  %v2175_v14 = vld [vmem:[#allocation19 + $0xc8] sm:$0xff]  }
 0x2fd   :  { %v694_v17 = vadd.f32 %v693_v12, %v685_v8  ;;  %v709_v18 = vrot.slane %v707_v13, 4  ;;  %v2173_v12 = vld [vmem:[#allocation19 + $0x80] sm:$0xff]  }
 0x2fe   :  { %v700_v19 = vadd.f32 %v699_v15, %v687_v10  ;;  %v715_v20 = vrot.slane %v708_v16, 4  ;;  %v2176_v15 = vld [vmem:[#allocation19 + $0x8] sm:$0xff]  }
 0x2ff   :  { %v695_v21 = vrot.slane %v694_v17, 2  ;;  %v710_v22 = vadd.f32 %v709_v18, %v707_v13  ;;  %v2174_v13 = vld [vmem:[#allocation19 + $0x48] sm:$0xff]   ;;  %v2179_v18 = vld [vmem:[#allocation19 + $0xd0] sm:$0xff]  }
 0x300   :  { %v701_v23 = vrot.slane %v700_v19, 2  ;;  %v716_v24 = vadd.f32 %v715_v20, %v708_v16  ;;  %v2177_v16 = vld [vmem:[#allocation19 + $0x88] sm:$0xff]   ;;  %v2181_v20 = vld [vmem:[#allocation19 + $0x90] sm:$0xff]  }
 0x301   :  { %v696_v25 = vadd.f32 %v695_v21, %v694_v17  ;;  %v711_v26 = vrot.slane %v710_v22, 2  ;;  %v2178_v17 = vld [vmem:[#allocation19 + $0x50] sm:$0xff]   ;;  %v2182_v21 = vld [vmem:[#allocation19 + $0x58] sm:$0xff]  }
 0x302   :  { %v702_v27 = vadd.f32 %v701_v23, %v700_v19  ;;  %v717_v28 = vrot.slane %v716_v24, 2  ;;  %v2180_v19 = vld [vmem:[#allocation19 + $0x10] sm:$0xff]   ;;  %v2184_v23 = vld [vmem:[#allocation19 + $0x18] sm:$0xff]  }
 0x303   :  { %v697_v29 = vrot.slane %v696_v25, 1  ;;  %v712_v30 = vadd.f32 %v711_v26, %v710_v22  ;;  %v2183_v22 = vld [vmem:[#allocation19 + $0xd8] sm:$0xff]   ;;  %v2187_v26 = vld [vmem:[#allocation19 + $0xe0] sm:$0xff]  }
 0x304   :  { %v703_v31 = vrot.slane %v702_v27, 1  ;;  %v718_v32 = vadd.f32 %v717_v28, %v716_v24  ;;  %v2185_v24 = vld [vmem:[#allocation19 + $0x98] sm:$0xff]   ;;  %v2189_v28 = vld [vmem:[#allocation19 + $0xa0] sm:$0xff]  }
 0x305   :  { %v698_v33 = vadd.f32 %v697_v29, %v696_v25  ;;  %v713_v34 = vrot.slane %v712_v30, 1  ;;  %v2186_v25 = vld [vmem:[#allocation19 + $0x60] sm:$0xff]   ;;  %v2190_v29 = vld [vmem:[#allocation19 + $0x68] sm:$0xff]  }
 0x306   :  { %v704_v35 = vadd.f32 %v703_v31, %v702_v27  ;;  %v719_v36 = vrot.slane %v718_v32, 1  ;;  %v2188_v27 = vld [vmem:[#allocation19 + $0x20] sm:$0xff]   ;;  %v2192_v31 = vld [vmem:[#allocation19 + $0x28] sm:$0xff]  }
 0x307   :  { %v705_v37 = vmul.f32 0.125, %v698_v33  ;;  %v714_v38 = vadd.f32 %v713_v34, %v712_v30  ;;  %v2191_v30 = vld [vmem:[#allocation19 + $0xe8] sm:$0xff]   ;;  %v2194_v33 = vld [vmem:[#allocation19 + $0x70] sm:$0xff]  }
 0x308   :  { %v706_v39 = vmul.f32 0.125, %v704_v35  ;;  %v720_v40 = vadd.f32 %v719_v36, %v718_v32  ;;  %v2193_v32 = vld [vmem:[#allocation19 + $0xa8] sm:$0xff]   ;;  %v2195_v34 = vld [vmem:[#allocation19 + $0xf0] sm:$0xff]  }
 0x309   :  { %v721_v41 = vmul.f32 0.125, %v714_v38  ;;  %v723_v42 = vmul.f32 %v705_v37, %v705_v37  ;;  %v727_v51 = vsub.f32 %v685_v8, %v705_v37  ;;  %v2196_v35 = vld [vmem:[#allocation19 + $0x30] sm:$0xff]   ;;  %v2198_v37 = vld [vmem:[#allocation19 + $0x78] sm:$0xff]  }
 0x30a   :  { %v722_v43 = vmul.f32 0.125, %v720_v40  ;;  %v724_v44 = vmul.f32 %v706_v39, %v706_v39  ;;  %v728_v54 = vsub.f32 %v687_v10, %v706_v39  ;;  %v2171_v10 = vld [vmem:[#allocation19 + $0xc0] sm:$0xff]   ;;  %v2197_v36 = vld [vmem:[#allocation19 + $0xb0] sm:$0xff]   ;;  %v2199_v38 = vld [vmem:[#allocation19 + $0xf8] sm:$0xff]  }
 0x30b   :  { %v725_v45 = vsub.f32 %v721_v41, %v723_v42  ;;  %1951 = vmatprep.subr.bf16.mxu0 %v2171_v10  ;;  %v2200_v39 = vld [vmem:[#allocation19 + $0x38] sm:$0xff]   ;;  %v2840_v41 = vsub.s32 2, %v2816_v1  ;;  %v829_v42 = vld [vmem:[%s2926_s16] sm:$0xf] }
 0x30c   :  { %v726_v46 = vsub.f32 %v722_v43, %v724_v44  ;;  %v2201_v40 = vld [vmem:[#allocation19 + $0xb8] sm:$0xff]   ;;  %v2846_v43 = vsub.s32 3, %v2816_v1  ;;  %v834_v44 = vrot.slane %v829_v42, %v2819_v2 }
 0x30d   :  { %v729_v47 = vadd.f32 1e-05, %v725_v45  ;;  %v842_v45 = vrot.slane %v829_v42, %v2840_v41 }
 0x30e   :  { %v730_v48 = vadd.f32 1e-05, %v726_v46  ;;  %v838_v46 = vrot.slane %v829_v42, %v2825_v4 }
 0x30f   :  { %2208 = vrsqrt.f32 %v729_v47  ;;  %v846_v47 = vrot.slane %v829_v42, %v2846_v43 }
 0x310   :  { %2210 = vrsqrt.f32 %v730_v48 }
 0x319   :  { %v2209_v53 = vpop.eup %2208 }
 0x31a   :  { %v2211_v56 = vpop.eup %2210  ;;  %v733_v57 = vmul.f32 %v2209_v53, %v727_v51 }
 0x31b   :  { %v734_v59 = vmul.f32 %v2211_v56, %v728_v54 }
 0x31c   :  { %v746_v61 = vmul.f32 %v739_v52, %v733_v57 }
 0x31d   :  { %v747_v62 = vmul.f32 %v743_v55, %v734_v59 }
 0x31e   :  { %v759_v63 = vadd.f32 %v752_v58, %v746_v61 }
 0x31f   :  { %v760_v3 = vadd.f32 %v756_v60, %v747_v62 }
 0x320   :  { %v761_v5 = vmax.f32 %v759_v63, 0.0 }
 0x321   :  { %v762_v6 = vmax.f32 %v760_v3, 0.0 }
 0x322   :  { %v763_v8 = vpack.c.bf16 %v761_v5, %v761_v5 }
 0x323   :  { %v764_v7 = vpack.c.bf16 %v762_v6, %v762_v6 }
 0x325   :  { %1203 = vmatprep.mubr.bf16.mxu1 %v764_v7  ;;  %1244 = vmatprep.mubr.bf16.mxu0 %v764_v7 }
 0x326   :  { %1204 = vmatmul.mubr.bf16.vlgmr.msra.gmra.mrb[4].mxu1 %v763_v8  ;;  %1245 = vmatmul.mubr.bf16.vlgmr.msra.gmra.mrb[8].mxu0 %v763_v8 }
 0x327   :  { %1930 = vmatpush3.bf16.msra.mxu1 %v2172_v11  ;;  %1952 = vmatpush3.bf16.msra.mxu0 %v2173_v12 }
 0x328   :  { %1931 = vmatprep.subr.bf16.mxu1 %v2174_v13  ;;  %1953 = vmatprep.subr.bf16.mxu0 %v2175_v14 }
 0x32b   :  { %1932 = vmatpush3.bf16.msra.mxu1 %v2176_v15  ;;  %1954 = vmatpush3.bf16.msra.mxu0 %v2177_v16 }
 0x32c   :  { %1933 = vmatprep.subr.bf16.mxu1 %v2178_v17  ;;  %1955 = vmatprep.subr.bf16.mxu0 %v2179_v18 }
 0x32f   :  { %1934 = vmatpush3.bf16.msra.mxu1 %v2180_v19  ;;  %1956 = vmatpush3.bf16.msra.mxu0 %v2181_v20 }
 0x330   :  { %1935 = vmatprep.subr.bf16.mxu1 %v2182_v21  ;;  %1957 = vmatprep.subr.bf16.mxu0 %v2183_v22 }
 0x333   :  { %1936 = vmatpush3.bf16.msra.mxu1 %v2184_v23  ;;  %1958 = vmatpush3.bf16.msra.mxu0 %v2185_v24 }
 0x334   :  { %1937 = vmatprep.subr.bf16.mxu1 %v2186_v25  ;;  %1959 = vmatprep.subr.bf16.mxu0 %v2187_v26 }
 0x337   :  { %1938 = vmatpush3.bf16.msra.mxu1 %v2188_v27  ;;  %1960 = vmatpush3.bf16.msra.mxu0 %v2189_v28 }
 0x338   :  { %1939 = vmatprep.subr.bf16.mxu1 %v2190_v29  ;;  %1961 = vmatprep.subr.bf16.mxu0 %v2191_v30 }
 0x33b   :  { %1940 = vmatpush3.bf16.msra.mxu1 %v2192_v31  ;;  %1962 = vmatpush3.bf16.msra.mxu0 %v2193_v32 }
 0x33c   :  { %1941 = vmatprep.subr.bf16.mxu1 %v2194_v33  ;;  %1963 = vmatprep.subr.bf16.mxu0 %v2195_v34 }
 0x33f   :  { %1942 = vmatpush3.bf16.msra.mxu1 %v2196_v35  ;;  %1964 = vmatpush3.bf16.msra.mxu0 %v2197_v36 }
 0x340   :  { %1943 = vmatprep.subr.bf16.mxu1 %v2198_v37  ;;  %1965 = vmatprep.subr.bf16.mxu0 %v2199_v38 }
 0x343   :  { %1944 = vmatpush3.bf16.msra.mxu1 %v2200_v39  ;;  %1966 = vmatpush3.bf16.msra.mxu0 %v2201_v40 }
 0x3f9   :  { %v1205_v48 = vpop.f32.mrb[4].mxu1  ;;  %v1246_v49 = vpop.f32.mrb[8].mxu0 }
 0x3fa   :  { %v2852_v50 = vadd.f32 %v1205_v48, %v834_v44  ;;  %v2854_v51 = vadd.f32 %v1246_v49, %v842_v45  ;;  %v1207_v52 = vpop.f32.mrb[5].mxu1  ;;  %v1248_v53 = vpop.f32.mrb[9].mxu0 }
 0x3fb   :  { %v2856_v54 = vadd.f32 %v1207_v52, %v838_v46  ;;  %v2858_v1 = vadd.f32 %v1248_v53, %v846_v47  ;;  %v1209_v55 = vpop.f32.mrb[6].mxu1  ;;  %v1250_v56 = vpop.f32.mrb[10].mxu0 }
 0x3fc   :  { %v1255_v57 = vrot.slane %v2852_v50, 4  ;;  %v1283_v58 = vmul.f32 %v2852_v50, %v2852_v50  ;;  %v1267_v59 = vrot.slane %v2854_v51, 4  ;;  %v1285_v60 = vmul.f32 %v2854_v51, %v2854_v51  ;;  %v1210_v61 = vpop.f32.mrb[7].mxu1  ;;  %v1251_v62 = vpop.f32.mrb[11].mxu0 }
 0x3fd   :  { %v1261_v63 = vrot.slane %v2856_v54, 4  ;;  %v1284_v3 = vmul.f32 %v2856_v54, %v2856_v54  ;;  %v1273_v5 = vrot.slane %v2858_v1, 4  ;;  %v1286_v6 = vmul.f32 %v2858_v1, %v2858_v1 }
 0x3fe   :  { %v1256_v7 = vadd.f32 %v1255_v57, %v2852_v50  ;;  %v1287_v8 = vrot.slane %v1283_v58, 4  ;;  %v1268_v9 = vadd.f32 %v1267_v59, %v2854_v51  ;;  %v1299_v10 = vrot.slane %v1285_v60, 4 }
 0x3ff   :  { %v1262_v11 = vadd.f32 %v1261_v63, %v2856_v54  ;;  %v1293_v12 = vrot.slane %v1284_v3, 4  ;;  %v1274_v13 = vadd.f32 %v1273_v5, %v2858_v1  ;;  %v1305_v14 = vrot.slane %v1286_v6, 4 }
 0x400   :  { %v1257_v15 = vrot.slane %v1256_v7, 2  ;;  %v1288_v16 = vadd.f32 %v1287_v8, %v1283_v58  ;;  %v1269_v17 = vrot.slane %v1268_v9, 2  ;;  %v1300_v18 = vadd.f32 %v1299_v10, %v1285_v60 }
 0x401   :  { %v1263_v19 = vrot.slane %v1262_v11, 2  ;;  %v1294_v20 = vadd.f32 %v1293_v12, %v1284_v3  ;;  %v1275_v21 = vrot.slane %v1274_v13, 2  ;;  %v1306_v22 = vadd.f32 %v1305_v14, %v1286_v6 }
 0x402   :  { %v1258_v23 = vadd.f32 %v1257_v15, %v1256_v7  ;;  %v1289_v24 = vrot.slane %v1288_v16, 2  ;;  %v1270_v25 = vadd.f32 %v1269_v17, %v1268_v9  ;;  %v1301_v26 = vrot.slane %v1300_v18, 2  ;;  %v1254_v17 = vld [vmem:[%s2928_s18] sm:$0xf] }
 0x403   :  { %v1264_v27 = vadd.f32 %v1263_v19, %v1262_v11  ;;  %v1295_v28 = vrot.slane %v1294_v20, 2  ;;  %v1276_v29 = vadd.f32 %v1275_v21, %v1274_v13  ;;  %v1307_v30 = vrot.slane %v1306_v22, 2 }
 0x404   :  { %v1259_v31 = vrot.slane %v1258_v23, 1  ;;  %v1290_v32 = vadd.f32 %v1289_v24, %v1288_v16  ;;  %v1271_v33 = vrot.slane %v1270_v25, 1  ;;  %v1302_v34 = vadd.f32 %v1301_v26, %v1300_v18  ;;  %v1253_v16 = vld [vmem:[%s2927_s17] sm:$0xf] }
 0x405   :  { %v1265_v35 = vrot.slane %v1264_v27, 1  ;;  %v1296_v36 = vadd.f32 %v1295_v28, %v1294_v20  ;;  %v1277_v37 = vrot.slane %v1276_v29, 1  ;;  %v1308_v38 = vadd.f32 %v1307_v30, %v1306_v22 }
 0x406   :  { %v1260_v39 = vadd.f32 %v1259_v31, %v1258_v23  ;;  %v1291_v40 = vrot.slane %v1290_v32, 1  ;;  %v1272_v42 = vadd.f32 %v1271_v33, %v1270_v25  ;;  %v1303_v44 = vrot.slane %v1302_v34, 1 }
 0x407   :  { %v1266_v45 = vadd.f32 %v1265_v35, %v1264_v27  ;;  %v1297_v46 = vrot.slane %v1296_v36, 1  ;;  %v1278_v47 = vadd.f32 %v1277_v37, %v1276_v29  ;;  %v1309_v48 = vrot.slane %v1308_v38, 1 }
 0x408   :  { %v1279_v49 = vmul.f32 0.125, %v1260_v39  ;;  %v1292_v52 = vadd.f32 %v1291_v40, %v1290_v32  ;;  %v1281_v53 = vmul.f32 0.125, %v1272_v42  ;;  %v1304_v55 = vadd.f32 %v1303_v44, %v1302_v34 }
 0x409   :  { %v1280_v56 = vmul.f32 0.125, %v1266_v45  ;;  %v1298_v57 = vadd.f32 %v1297_v46, %v1296_v36  ;;  %v1282_v58 = vmul.f32 0.125, %v1278_v47  ;;  %v1310_v59 = vadd.f32 %v1309_v48, %v1308_v38 }
 0x40a   :  { %v1311_v60 = vmul.f32 0.125, %v1292_v52  ;;  %v1315_v61 = vmul.f32 %v1279_v49, %v1279_v49  ;;  %v1313_v62 = vmul.f32 0.125, %v1304_v55  ;;  %v1317_v63 = vmul.f32 %v1281_v53, %v1281_v53  ;;  %v1878_v52 = vld [vmem:[%s2930_s20] ss:$0 sm:$0xff]  ;;  %s2522_s20 = smov [#allocation20]  }
 0x40b   :  { %v1312_v3 = vmul.f32 0.125, %v1298_v57  ;;  %v1316_v5 = vmul.f32 %v1280_v56, %v1280_v56  ;;  %v1314_v7 = vmul.f32 0.125, %v1310_v59  ;;  %v1318_v8 = vmul.f32 %v1282_v58, %v1282_v58  ;;  %s1761_s29 = sshll.u32 %s2522_s20, 4  ;;  %s1762_s29 = int_to_ptr.vmem [resolvable:$true] %s1761_s29 }
 0x40c   :  { %v1319_v6 = vsub.f32 %v1311_v60, %v1315_v61  ;;  %v1321_v9 = vsub.f32 %v1313_v62, %v1317_v63  ;;  %v1323_v18 = vsub.f32 %v2852_v50, %v1279_v49  ;;  %v1343_v19 = vrot.slane %v1253_v16, %v2819_v2  ;;  %s2466_s4 = scalar_lea.vmem %s1762_s29, 128  ;;  %p2471_p5 = scmp.lt.s32.totalorder %s1762_s29, %s1762_s29 }
 0x40d   :  { %v1320_v10 = vsub.f32 %v1312_v3, %v1316_v5  ;;  %v1322_v12 = vsub.f32 %v1314_v7, %v1318_v8  ;;  %v1325_v21 = vsub.f32 %v2854_v51, %v1281_v53  ;;  %v1351_v22 = vrot.slane %v1253_v16, %v2840_v41  ;;  %p2467_p4 = scmp.ne.s32.totalorder %s1762_s29, %s2466_s4  ;;  %p2472_p6 = scmp.lt.s32.totalorder %s2466_s4, %s2466_s4 }
 0x40e   :  { %v1327_v11 = vadd.f32 1e-05, %v1319_v6  ;;  %v1329_v13 = vadd.f32 1e-05, %v1321_v9  ;;  %v1324_v25 = vsub.f32 %v2856_v54, %v1280_v56  ;;  %v1347_v26 = vrot.slane %v1253_v16, %v2825_v4 }
 0x40f   :  { %v1328_v14 = vadd.f32 1e-05, %v1320_v10  ;;  %v1330_v15 = vadd.f32 1e-05, %v1322_v12  ;;  %v1368_v27 = vrot.slane %v1254_v17, %v2819_v2  ;;  %v1326_v30 = vsub.f32 %v2858_v1, %v1282_v58  ;;  %p2473_p7 = por %p2472_p6, %p2471_p5 }
 0x410   :  { %2212 = vrsqrt.f32 %v1327_v11  ;;  %v1355_v50 = vrot.slane %v1253_v16, %v2846_v43  ;;  %v1376_v31 = vrot.slane %v1254_v17, %v2840_v41  ;;  %v1372_v33 = vrot.slane %v1254_v17, %v2825_v4 }
 0x411   :  { %2214 = vrsqrt.f32 %v1329_v13  ;;  %v1380_v54 = vrot.slane %v1254_v17, %v2846_v43  ;;  %v1741_v55 = vand.u32 127, %v560_v0  ;;  %p2474_p8 = pnand %p2473_p7, %p2467_p4 }
 0x412   :  { %2216 = vrsqrt.f32 %v1328_v14 }
 0x413   :  { %2218 = vrsqrt.f32 %v1330_v15  ;;  %vm1742_vm1 = vcmp.lt.s32.totalorder %v1741_v55, 10 }
 0x41a   :  { %v2213_v20 = vpop.eup %2212 }
 0x41b   :  { %v2215_v23 = vpop.eup %2214  ;;  %v1335_v24 = vmul.f32 %v2213_v20, %v1323_v18 }
 0x41c   :  { %v2217_v28 = vpop.eup %2216  ;;  %v1337_v29 = vmul.f32 %v2215_v23, %v1325_v21 }
 0x41d   :  { %v2219_v32 = vpop.eup %2218  ;;  %v1336_v51 = vmul.f32 %v2217_v28, %v1324_v25  ;;  %v1360_v34 = vmul.f32 %v1343_v19, %v1335_v24 }
 0x41e   :  { %v1338_v35 = vmul.f32 %v2219_v32, %v1326_v30  ;;  %v1362_v36 = vmul.f32 %v1351_v22, %v1337_v29 }
 0x41f   :  { %v1361_v37 = vmul.f32 %v1347_v26, %v1336_v51  ;;  %v1385_v38 = vadd.f32 %v1368_v27, %v1360_v34 }
 0x420   :  { %v1363_v2 = vmul.f32 %v1355_v50, %v1338_v35  ;;  %v1387_v39 = vadd.f32 %v1376_v31, %v1362_v36 }
 0x421   :  { %v1386_v40 = vadd.f32 %v1372_v33, %v1361_v37  ;;  %v1389_v1 = vmax.f32 %v1385_v38, 0.0 }
 0x422   :  { %v1388_v42 = vadd.f32 %v1380_v54, %v1363_v2  ;;  %v1391_v45 = vmax.f32 %v1387_v39, 0.0 }
 0x423   :  { %v1390_v44 = vmax.f32 %v1386_v40, 0.0  ;;  %v1393_v48 = vpack.c.bf16 %v1389_v1, %v1389_v1 }
 0x424   :  { %v1392_v46 = vmax.f32 %v1388_v42, 0.0  ;;  %v1395_v4 = vpack.c.bf16 %v1391_v45, %v1391_v45 }
 0x425   :  { %v1394_v41 = vpack.c.bf16 %v1390_v44, %v1390_v44 }
 0x426   :  { %v1396_v47 = vpack.c.bf16 %v1392_v46, %v1392_v46 }
 0x427   :  { %1692 = vmatprep.mubr.bf16.mxu1 %v1394_v41 }
 0x428   :  { %1732 = vmatprep.mubr.bf16.mxu0 %v1396_v47  ;;  %1693 = vmatmul.mubr.bf16.vlgmr.msra.gmra.mrb[8].mxu1 %v1393_v48 }
 0x429   :  { %1733 = vmatmul.mubr.bf16.vlgmr.msra.gmra.mrb[12].mxu0 %v1395_v4 }
 0x4fb   :  { %v1945_v43 = vpop.f32.mrb[8].mxu1 }
 0x4fc   :  { %v1967_v49 = vpop.f32.mrb[12].mxu0  ;;  %v1946_v53 = vpop.f32.mrb[9].mxu1 }
 0x4fd   :  { %v1947_v56 = vadd.f32 %v1946_v53, %v1945_v43  ;;  %v1968_v57 = vpop.f32.mrb[13].mxu0  ;;  %v1948_v58 = vpop.f32.mrb[10].mxu1 }
 0x4fe   :  { %v1969_v59 = vadd.f32 %v1968_v57, %v1967_v49  ;;  %v1970_v60 = vpop.f32.mrb[14].mxu0  ;;  %v1949_v61 = vpop.f32.mrb[11].mxu1 }
 0x4ff   :  { %v1695_v62 = vadd.f32 %v1947_v56, %v1878_v52  ;;  %v1971_v63 = vpop.f32.mrb[15].mxu0 }
 0x501   :  { %v1735_v3 = vadd.f32 %v1969_v59, %v1695_v62 }
 0x503   :  { %v1743_v5 = vsel %vm1742_vm1, %v1735_v3, -1e+30 }
 0x504   :  { %1744 = vmax.xlane.f32.xlu0 %v1743_v5 }
 0x591   :  { %v1745_v6 = vpop.xlane.xlu0 %1744 }
 0x592   :  { %v1746_v7 = vsub.f32 %v1743_v5, %v1745_v6 }
 0x594   :  { %v1747_v8 = vmul.f32 1.442695, %v1746_v7 }
 0x596   :  { %2220 = vpow2.f32 %v1747_v8 }
 0x5a0   :  { %v2221_v9 = vpop.eup %2220 }
 0x5a1   :  { %1749 = vadd.xlane.f32.xlu0 %v2221_v9 }
 0x62e   :  { %v1750_v10 = vpop.xlane.xlu0 %1749 }
 0x62f   :  { %2222 = vlog2.f32 %v1750_v10 }
 0x639   :  { %v2223_v0 = vpop.eup %2222 }
 0x63a   :  { %v1752_v11 = vmul.f32 0.6931472, %v2223_v0 }
 0x63c   :  { %v1753_v12 = vsub.f32 %v1746_v7, %v1752_v11 }
 0x63e   :  { %1754 = vst [vmem:[#allocation20] sm:$0xff] %v1753_v12 }
 0x63f   :  { %2477 = shalt.err (!%p2474_p8)
}
 0x640   :  { %s2958_s5 = sld [smem:[#allocation34_spill]] }
 0x646   :  { %s2478_s2 = scalar_lea.hbm %s2958_s5, 128 }
 0x647   :  { %p2479_p9 = scmp.ne.s32.totalorder %s2958_s5, %s2478_s2  ;;  %p2482_p10 = scmp.lt.u32.totalorder %s2478_s2, %s2958_s5 }
 0x649   :  { %p2484_p11 = pnand %p2482_p10, %p2479_p9 }
 0x64b   :  { %2487 = shalt.err (!%p2484_p11)
}
 0x64c   :  { %1764 = dma.vmem_to_hbm [thread:$0]  %s1762_s29, 128, %s2958_s5, [#allocation4]  }
 0x64d   :  { %2500 = dma.done.wait [#allocation4], 128  }
 0x64e   :  { %2501 = vsyncadd [#allocation4], 4294967168 }
 0x64f   :  { %1768 = vsyncpa [#allocation3], 1 }
 0x650   :  { %1769 = vsyncpa [#allocation6], 1 }
 0x651   :  { %1770 = vsyncpa [#allocation9], 1 }
 0x652   :  { %1771 = vsyncpa [#allocation12], 1 }
 0x653   :  { %1772 = vsyncpa [#allocation15], 1 }
 0x654   :  { %1773 = vsyncpa [#allocation18], 1 }
 0x655   :  { %1774 = vsyncpa [#allocation4], 1 }

</bundles_post_ra>
